<compile_context>
chip_gen: v7x
topology: tpu7x:2x2x1
jax: 0.10.0
libtpu: 0.0.40
codegen_flags: <defaults>
</compile_context>

<pallas_src>
import math
import functools

import jax
import jax.numpy as jnp
from jax.experimental import pallas as pl
from jax.experimental.pallas import tpu as pltpu


def _round_up(x, m):
    return ((x + m - 1) // m) * m


def _vmem_limit_bytes():
    # v5e/v6e: 128 MiB VMEM per TensorCore, v7x: 64 MiB. Leave ~20% headroom.
    try:
        cap = pltpu.get_tpu_info().vmem_capacity_bytes
    except Exception:
        cap = 64 * 1024 * 1024          # conservative (v7x-sized) fallback
    return int(cap * 0.8)


def _mxu_lane_multiple():
    # v6e/v7x MXUs are 2x256x256 -> pad hidden dim to 256 so contractions fill
    # the array; v2-v5 MXUs are 128x128 -> 128 is enough.
    try:
        kind = jax.devices()[0].device_kind.lower()
    except Exception:
        return 128
    for tag in ("v2", "v3", "v4", "v5"):
        if tag in kind:
            return 128
    return 256


# ---------------------------------------------------------------------------
# Fused GCNII layer-stack kernel: grid=(L,), h carried in the resident output
# ---------------------------------------------------------------------------
def _gcnii_layers_kernel(betas_ref,          # SMEM [L] f32 (scalar prefetch)
                         h0_ref,             # VMEM [N, hid] f32 (resident)
                         a_ref,              # VMEM [N, N]  bf16 (resident)
                         w_ref,              # VMEM [hid, hid] bf16 (streamed per layer)
                         h_ref,              # VMEM [N, hid] bf16 output = h carry
                         *, alpha):
    layer = pl.program_id(0)

    # h = h0 before the first layer (single downcast; h0 itself stays f32).
    @pl.when(layer == 0)
    def _init():
        h_ref[...] = h0_ref[...].astype(h_ref.dtype)

    beta = betas_ref[layer]                  # scalar from SMEM

    # hi = A_hat @ h   (bf16 MXU inputs, f32 accumulation)
    hi = jnp.dot(a_ref[...], h_ref[...], preferred_element_type=jnp.float32)
    # initial residual (f32 elementwise — VPU friendly on v5e)
    support = (1.0 - alpha) * hi + alpha * h0_ref[...]
    # identity mapping
    sw = jnp.dot(support.astype(jnp.bfloat16), w_ref[...],
                 preferred_element_type=jnp.float32)
    h_new = jnp.maximum((1.0 - beta) * support + beta * sw, 0.0)
    # single downcast when writing the carry
    h_ref[...] = h_new.astype(h_ref.dtype)


def _run_gcnii_layers(a_bf16, h0_f32, w_stack_bf16, betas, *, alpha,
                      single_buffer_residents):
    L = int(betas.shape[0])
    n, hid = h0_f32.shape

    def resident(shape):
        zero_idx = (0,) * len(shape)
        if single_buffer_residents:
            # Constant-index blocks don't need double buffering.
            return pl.BlockSpec(shape, lambda l, betas: zero_idx,
                                pipeline_mode=pl.Buffered(1))
        return pl.BlockSpec(shape, lambda l, betas: zero_idx)

    grid_spec = pltpu.PrefetchScalarGridSpec(
        num_scalar_prefetch=1,               # betas -> SMEM
        grid=(L,),
        in_specs=[
            resident((n, hid)),                                   # h0 (f32, resident)
            resident((n, n)),                                     # A_hat (bf16, resident)
            pl.BlockSpec((hid, hid), lambda l, betas: (l, 0)),    # per-layer W (streamed)
        ],
        out_specs=resident((n, hid)),                             # h carry (bf16, resident)
    )

    flops = L * (2 * n * n * hid + 2 * n * hid * hid)
    bytes_accessed = (n * n * 2 + n * hid * 4 + L * hid * hid * 2 + n * hid * 2)

    return pl.pallas_call(
        functools.partial(_gcnii_layers_kernel, alpha=alpha),
        out_shape=jax.ShapeDtypeStruct((n, hid), jnp.bfloat16),
        grid_spec=grid_spec,
        compiler_params=pltpu.CompilerParams(
            dimension_semantics=("arbitrary",),     # layer axis carries h -> sequential
            vmem_limit_bytes=_vmem_limit_bytes()),
        cost_estimate=pl.CostEstimate(flops=flops, transcendentals=0,
                                      bytes_accessed=bytes_accessed),
    )(betas, h0_f32, a_bf16, w_stack_bf16)


def gcnii_net_forward(a_hat, features, params, *, num_layers, alpha, lamda):
    """Full GCNIINet forward. Returns [N, num_classes] float32."""
    assert num_layers >= 1
    betas = jnp.asarray(
        [math.log(lamda / (i + 1) + 1.0) for i in range(num_layers)], jnp.float32)

    # fc0 / fc1 are single-use matmuls -> plain XLA ops so their operands don't
    # sit in VMEM for all L fused-layer steps.
    h0 = jax.nn.relu(
        jnp.dot(features, params["fc0_w"], preferred_element_type=jnp.float32)
        + params["fc0_b"]).astype(jnp.float32)                     # [N, hid_pad]

    a_bf16 = a_hat.astype(jnp.bfloat16)
    w_stack = params["conv_w"].astype(jnp.bfloat16)                # [L*hid_pad, hid_pad]

    try:
        h = _run_gcnii_layers(a_bf16, h0, w_stack, betas, alpha=alpha,
                              single_buffer_residents=True)
    except Exception:
        # Fallback if this jax build rejects pipeline_mode=pl.Buffered(1).
        h = _run_gcnii_layers(a_bf16, h0, w_stack, betas, alpha=alpha,
                              single_buffer_residents=False)

    out = jnp.dot(h, params["fc1_w"].astype(jnp.bfloat16),
                  preferred_element_type=jnp.float32) + params["fc1_b"]
    return out


# ---------------------------------------------------------------------------
# Parameter init (xavier_uniform like reset_parameters); hidden dim padded to
# the MXU-friendly multiple.  Zero padding is exact: padded hidden columns stay
# identically zero through the whole forward pass.
# ---------------------------------------------------------------------------
def xavier_uniform(key, fan_in, fan_out, gain=1.0):
    bound = gain * math.sqrt(6.0 / (fan_in + fan_out))
    return jax.random.uniform(key, (fan_in, fan_out), jnp.float32, -bound, bound)


def init_gcnii_params(key, num_feats, num_classes, num_hidden, num_layers,
                      hidden_multiple=128):
    hid_pad = _round_up(num_hidden, hidden_multiple)
    keys = jax.random.split(key, num_layers + 2)
    relu_gain = math.sqrt(2.0)               # cal_gain(F.relu)

    fc0_w = jnp.pad(xavier_uniform(keys[0], num_feats, num_hidden, gain=relu_gain),
                    ((0, 0), (0, hid_pad - num_hidden)))           # [F, hid_pad]
    fc1_w = jnp.pad(xavier_uniform(keys[1], num_hidden, num_classes, gain=1.0),
                    ((0, hid_pad - num_hidden), (0, 0)))           # [hid_pad, C]
    conv_w = [jnp.pad(xavier_uniform(keys[2 + i], num_hidden, num_hidden, gain=1.0),
                      ((0, hid_pad - num_hidden), (0, hid_pad - num_hidden)))
              for i in range(num_layers)]

    return {
        "fc0_w": fc0_w,
        "fc0_b": jnp.zeros((hid_pad,), jnp.float32),
        "fc1_w": fc1_w,
        "fc1_b": jnp.zeros((num_classes,), jnp.float32),
        "conv_w": jnp.concatenate(conv_w, axis=0),   # [L*hid_pad, hid_pad]
        "hid_pad": hid_pad,
    }


def build_normalized_adjacency(key, num_nodes):
    # Random undirected graph with self-loops, sym-normalized (graph_norm=True).
    a = (jax.random.uniform(key, (num_nodes, num_nodes)) < 0.05).astype(jnp.float32)
    a = jnp.maximum(a, a.T)
    a = a + jnp.eye(num_nodes, dtype=jnp.float32)      # self-loops -> deg >= 1
    deg = jnp.sum(a, axis=1)
    d_inv_sqrt = 1.0 / jnp.sqrt(deg)
    return a * d_inv_sqrt[:, None] * d_inv_sqrt[None, :]


if __name__ == "__main__":
    # Small, TPU-friendly demo shapes.
    NUM_NODES = 128
    NUM_FEATS = 32
    NUM_HIDDEN = 128
    NUM_CLASSES = 8
    NUM_LAYERS = 2
    ALPHA = 0.1
    LAMDA = 0.5

    key = jax.random.PRNGKey(0)
    k_graph, k_feat, k_param = jax.random.split(key, 3)

    a_hat = build_normalized_adjacency(k_graph, NUM_NODES)
    features = jax.random.normal(k_feat, (NUM_NODES, NUM_FEATS), jnp.float32)
    params = init_gcnii_params(k_param, NUM_FEATS, NUM_CLASSES, NUM_HIDDEN,
                               NUM_LAYERS, hidden_multiple=_mxu_lane_multiple())

    out = gcnii_net_forward(a_hat, features, params,
                            num_layers=NUM_LAYERS, alpha=ALPHA, lamda=LAMDA)
    out = jax.block_until_ready(out)

    assert out.shape == (NUM_NODES, NUM_CLASSES)
    assert bool(jnp.all(jnp.isfinite(out)))
    print("KERNEL_OK")
</pallas_src>

<mosaic_0001>
module attributes {stable_mosaic.version = 11 : i64} {
  func.func @_gcnii_layers_kernel(%arg0: i32, %arg1: memref<2xf32, #tpu.memory_space<smem>>, %arg2: memref<128x256xf32, #tpu.memory_space<vmem>>, %arg3: memref<128x128xbf16, #tpu.memory_space<vmem>>, %arg4: memref<256x256xbf16, #tpu.memory_space<vmem>>, %arg5: memref<128x256xbf16, #tpu.memory_space<vmem>>) attributes {dimension_semantics = [#tpu.dimension_semantics<arbitrary>], iteration_bounds = array<i64: 2>, scalar_prefetch = 1 : i64, scratch_operands = 0 : i64, tpu.core_type = #tpu.core_type<tc>, window_params = [{pipeline_mode = #tpu.pipeline_mode<synchronous>, transform_indices = @transform_0, window_bounds = array<i64: 128, 256>}, {pipeline_mode = #tpu.pipeline_mode<synchronous>, transform_indices = @transform_1, window_bounds = array<i64: 128, 128>}, {transform_indices = @transform_2, window_bounds = array<i64: 256, 256>}, {pipeline_mode = #tpu.pipeline_mode<synchronous>, transform_indices = @transform_3, window_bounds = array<i64: 128, 256>}]} {
    %c0_i32 = arith.constant 0 : i32
    %0 = arith.cmpi eq, %arg0, %c0_i32 : i32
    %1 = arith.extui %0 : i1 to i32
    %c0_i32_0 = arith.constant 0 : i32
    %2 = arith.cmpi ne, %1, %c0_i32_0 : i32
    scf.if %2 {
      %c0_15 = arith.constant 0 : index
      %c0_16 = arith.constant 0 : index
      %27 = vector.load %arg2[%c0_15, %c0_16] : memref<128x256xf32, #tpu.memory_space<vmem>>, vector<128x256xf32>
      %28 = arith.truncf %27 : vector<128x256xf32> to vector<128x256xbf16>
      %c0_17 = arith.constant 0 : index
      %c0_18 = arith.constant 0 : index
      %29 = vector.load %arg5[%c0_17, %c0_18] : memref<128x256xbf16, #tpu.memory_space<vmem>>, vector<128x256xbf16>
      tpu.vector_store %arg5[%c0_17, %c0_18], %28 {strides = array<i32>} : memref<128x256xbf16, #tpu.memory_space<vmem>>, vector<128x256xbf16>,
    } else {
    }
    %3 = arith.index_cast %arg0 : i32 to index
    %4 = memref.load %arg1[%3] : memref<2xf32, #tpu.memory_space<smem>>
    %c0 = arith.constant 0 : index
    %c0_1 = arith.constant 0 : index
    %5 = vector.load %arg3[%c0, %c0_1] : memref<128x128xbf16, #tpu.memory_space<vmem>>, vector<128x128xbf16>
    %c0_2 = arith.constant 0 : index
    %c0_3 = arith.constant 0 : index
    %6 = vector.load %arg5[%c0_2, %c0_3] : memref<128x256xbf16, #tpu.memory_space<vmem>>, vector<128x256xbf16>
    %cst = arith.constant dense<0.000000e+00> : vector<128x256xf32>
    %7 = tpu.matmul %5, %6, %cst {dimension_numbers = #tpu.dot_dimension_numbers<[1], [0], [0], [1], [0, 0, 1, 1], [], []>} : vector<128x128xbf16>, vector<128x256xbf16>, vector<128x256xf32> -> vector<128x256xf32>
    %cst_4 = arith.constant 0.899999976 : f32
    %8 = vector.broadcast %cst_4 : f32 to vector<128x256xf32>
    %9 = arith.mulf %8, %7 : vector<128x256xf32>
    %c0_5 = arith.constant 0 : index
    %c0_6 = arith.constant 0 : index
    %10 = vector.load %arg2[%c0_5, %c0_6] : memref<128x256xf32, #tpu.memory_space<vmem>>, vector<128x256xf32>
    %cst_7 = arith.constant 1.000000e-01 : f32
    %11 = vector.broadcast %cst_7 : f32 to vector<128x256xf32>
    %12 = arith.mulf %11, %10 : vector<128x256xf32>
    %13 = arith.addf %9, %12 : vector<128x256xf32>
    %14 = arith.truncf %13 : vector<128x256xf32> to vector<128x256xbf16>
    %c0_8 = arith.constant 0 : index
    %c0_9 = arith.constant 0 : index
    %15 = vector.load %arg4[%c0_8, %c0_9] : memref<256x256xbf16, #tpu.memory_space<vmem>>, vector<256x256xbf16>
    %cst_10 = arith.constant dense<0.000000e+00> : vector<128x256xf32>
    %16 = tpu.matmul %14, %15, %cst_10 {dimension_numbers = #tpu.dot_dimension_numbers<[1], [0], [0], [1], [0, 0, 1, 1], [], []>} : vector<128x256xbf16>, vector<256x256xbf16>, vector<128x256xf32> -> vector<128x256xf32>
    %cst_11 = arith.constant 1.000000e+00 : f32
    %17 = arith.subf %cst_11, %4 : f32
    %18 = vector.broadcast %17 : f32 to vector<128x256xf32>
    %19 = arith.mulf %18, %13 : vector<128x256xf32>
    %20 = vector.broadcast %4 : f32 to vector<128x256xf32>
    %21 = arith.mulf %20, %16 : vector<128x256xf32>
    %22 = arith.addf %19, %21 : vector<128x256xf32>
    %cst_12 = arith.constant 0.000000e+00 : f32
    %23 = vector.broadcast %cst_12 : f32 to vector<128x256xf32>
    %24 = arith.maximumf %22, %23 : vector<128x256xf32>
    %25 = arith.truncf %24 : vector<128x256xf32> to vector<128x256xbf16>
    %c0_13 = arith.constant 0 : index
    %c0_14 = arith.constant 0 : index
    %26 = vector.load %arg5[%c0_13, %c0_14] : memref<128x256xbf16, #tpu.memory_space<vmem>>, vector<128x256xbf16>
    tpu.vector_store %arg5[%c0_13, %c0_14], %25 {strides = array<i32>} : memref<128x256xbf16, #tpu.memory_space<vmem>>, vector<128x256xbf16>,
    return
  }
  func.func @transform_0(%arg0: i32, %arg1: memref<2xf32, #tpu.memory_space<smem>>) -> (i32, i32) {
    %c0_i32 = arith.constant 0 : i32
    %c0_i32_0 = arith.constant 0 : i32
    %c0_i32_1 = arith.constant 0 : i32
    return %c0_i32, %c0_i32_0 : i32, i32
  }
  func.func @transform_1(%arg0: i32, %arg1: memref<2xf32, #tpu.memory_space<smem>>) -> (i32, i32) {
    %c0_i32 = arith.constant 0 : i32
    %c0_i32_0 = arith.constant 0 : i32
    %c0_i32_1 = arith.constant 0 : i32
    return %c0_i32, %c0_i32_0 : i32, i32
  }
  func.func @transform_2(%arg0: i32, %arg1: memref<2xf32, #tpu.memory_space<smem>>) -> (i32, i32) {
    %c0_i32 = arith.constant 0 : i32
    %c0_i32_0 = arith.constant 0 : i32
    return %arg0, %c0_i32 : i32, i32
  }
  func.func @transform_3(%arg0: i32, %arg1: memref<2xf32, #tpu.memory_space<smem>>) -> (i32, i32) {
    %c0_i32 = arith.constant 0 : i32
    %c0_i32_0 = arith.constant 0 : i32
    %c0_i32_1 = arith.constant 0 : i32
    return %c0_i32, %c0_i32_0 : i32, i32
  }
}

module attributes {stable_mosaic.version = 11 : i64} {
  func.func @_gcnii_layers_kernel(%arg0: i32, %arg1: memref<2xf32, #tpu.memory_space<smem>>, %arg2: memref<128x256xf32, #tpu.memory_space<vmem>>, %arg3: memref<128x128xbf16, #tpu.memory_space<vmem>>, %arg4: memref<256x256xbf16, #tpu.memory_space<vmem>>, %arg5: memref<128x256xbf16, #tpu.memory_space<vmem>>) attributes {dimension_semantics = [#tpu.dimension_semantics<arbitrary>], iteration_bounds = array<i64: 2>, scalar_prefetch = 1 : i64, scratch_operands = 0 : i64, tpu.core_type = #tpu.core_type<tc>, window_params = [{pipeline_mode = #tpu.pipeline_mode<synchronous>, transform_indices = @transform_0, window_bounds = array<i64: 128, 256>}, {pipeline_mode = #tpu.pipeline_mode<synchronous>, transform_indices = @transform_1, window_bounds = array<i64: 128, 128>}, {transform_indices = @transform_2, window_bounds = array<i64: 256, 256>}, {pipeline_mode = #tpu.pipeline_mode<synchronous>, transform_indices = @transform_3, window_bounds = array<i64: 128, 256>}]} {
    %c0_i32 = arith.constant 0 : i32
    %0 = arith.cmpi eq, %arg0, %c0_i32 : i32
    %1 = arith.extui %0 : i1 to i32
    %c0_i32_0 = arith.constant 0 : i32
    %2 = arith.cmpi ne, %1, %c0_i32_0 : i32
    scf.if %2 {
      %c0_15 = arith.constant 0 : index
      %c0_16 = arith.constant 0 : index
      %27 = vector.load %arg2[%c0_15, %c0_16] : memref<128x256xf32, #tpu.memory_space<vmem>>, vector<128x256xf32>
      %28 = arith.truncf %27 : vector<128x256xf32> to vector<128x256xbf16>
      %c0_17 = arith.constant 0 : index
      %c0_18 = arith.constant 0 : index
      %29 = vector.load %arg5[%c0_17, %c0_18] : memref<128x256xbf16, #tpu.memory_space<vmem>>, vector<128x256xbf16>
      tpu.vector_store %arg5[%c0_17, %c0_18], %28 {strides = array<i32>} : memref<128x256xbf16, #tpu.memory_space<vmem>>, vector<128x256xbf16>,
    } else {
    }
    %3 = arith.index_cast %arg0 : i32 to index
    %4 = memref.load %arg1[%3] : memref<2xf32, #tpu.memory_space<smem>>
    %c0 = arith.constant 0 : index
    %c0_1 = arith.constant 0 : index
    %5 = vector.load %arg3[%c0, %c0_1] : memref<128x128xbf16, #tpu.memory_space<vmem>>, vector<128x128xbf16>
    %c0_2 = arith.constant 0 : index
    %c0_3 = arith.constant 0 : index
    %6 = vector.load %arg5[%c0_2, %c0_3] : memref<128x256xbf16, #tpu.memory_space<vmem>>, vector<128x256xbf16>
    %cst = arith.constant dense<0.000000e+00> : vector<128x256xf32>
    %7 = tpu.matmul %5, %6, %cst {dimension_numbers = #tpu.dot_dimension_numbers<[1], [0], [0], [1], [0, 0, 1, 1], [], []>} : vector<128x128xbf16>, vector<128x256xbf16>, vector<128x256xf32> -> vector<128x256xf32>
    %cst_4 = arith.constant 0.899999976 : f32
    %8 = vector.broadcast %cst_4 : f32 to vector<128x256xf32>
    %9 = arith.mulf %8, %7 : vector<128x256xf32>
    %c0_5 = arith.constant 0 : index
    %c0_6 = arith.constant 0 : index
    %10 = vector.load %arg2[%c0_5, %c0_6] : memref<128x256xf32, #tpu.memory_space<vmem>>, vector<128x256xf32>
    %cst_7 = arith.constant 1.000000e-01 : f32
    %11 = vector.broadcast %cst_7 : f32 to vector<128x256xf32>
    %12 = arith.mulf %11, %10 : vector<128x256xf32>
    %13 = arith.addf %9, %12 : vector<128x256xf32>
    %14 = arith.truncf %13 : vector<128x256xf32> to vector<128x256xbf16>
    %c0_8 = arith.constant 0 : index
    %c0_9 = arith.constant 0 : index
    %15 = vector.load %arg4[%c0_8, %c0_9] : memref<256x256xbf16, #tpu.memory_space<vmem>>, vector<256x256xbf16>
    %cst_10 = arith.constant dense<0.000000e+00> : vector<128x256xf32>
    %16 = tpu.matmul %14, %15, %cst_10 {dimension_numbers = #tpu.dot_dimension_numbers<[1], [0], [0], [1], [0, 0, 1, 1], [], []>} : vector<128x256xbf16>, vector<256x256xbf16>, vector<128x256xf32> -> vector<128x256xf32>
    %cst_11 = arith.constant 1.000000e+00 : f32
    %17 = arith.subf %cst_11, %4 : f32
    %18 = vector.broadcast %17 : f32 to vector<128x256xf32>
    %19 = arith.mulf %18, %13 : vector<128x256xf32>
    %20 = vector.broadcast %4 : f32 to vector<128x256xf32>
    %21 = arith.mulf %20, %16 : vector<128x256xf32>
    %22 = arith.addf %19, %21 : vector<128x256xf32>
    %cst_12 = arith.constant 0.000000e+00 : f32
    %23 = vector.broadcast %cst_12 : f32 to vector<128x256xf32>
    %24 = arith.maximumf %22, %23 : vector<128x256xf32>
    %25 = arith.truncf %24 : vector<128x256xf32> to vector<128x256xbf16>
    %c0_13 = arith.constant 0 : index
    %c0_14 = arith.constant 0 : index
    %26 = vector.load %arg5[%c0_13, %c0_14] : memref<128x256xbf16, #tpu.memory_space<vmem>>, vector<128x256xbf16>
    tpu.vector_store %arg5[%c0_13, %c0_14], %25 {strides = array<i32>} : memref<128x256xbf16, #tpu.memory_space<vmem>>, vector<128x256xbf16>,
    return
  }
  func.func @transform_0(%arg0: i32, %arg1: memref<2xf32, #tpu.memory_space<smem>>) -> (i32, i32) {
    %c0_i32 = arith.constant 0 : i32
    %c0_i32_0 = arith.constant 0 : i32
    %c0_i32_1 = arith.constant 0 : i32
    return %c0_i32, %c0_i32_0 : i32, i32
  }
  func.func @transform_1(%arg0: i32, %arg1: memref<2xf32, #tpu.memory_space<smem>>) -> (i32, i32) {
    %c0_i32 = arith.constant 0 : i32
    %c0_i32_0 = arith.constant 0 : i32
    %c0_i32_1 = arith.constant 0 : i32
    return %c0_i32, %c0_i32_0 : i32, i32
  }
  func.func @transform_2(%arg0: i32, %arg1: memref<2xf32, #tpu.memory_space<smem>>) -> (i32, i32) {
    %c0_i32 = arith.constant 0 : i32
    %c0_i32_0 = arith.constant 0 : i32
    return %arg0, %c0_i32 : i32, i32
  }
  func.func @transform_3(%arg0: i32, %arg1: memref<2xf32, #tpu.memory_space<smem>>) -> (i32, i32) {
    %c0_i32 = arith.constant 0 : i32
    %c0_i32_0 = arith.constant 0 : i32
    %c0_i32_1 = arith.constant 0 : i32
    return %c0_i32, %c0_i32_0 : i32, i32
  }
}

</mosaic_0001>

<bundles_post_ra>
// kernel: tpu_custom_call.1
= control target key start
LH: loop header
LB: loop body
LE: loop exit
PB: predicated region body
PF: predicated region fallthrough
CT: control target
= control target key end

     0   :  { %s2396_s0 = inlined_call_operand.hbm [shape: f32[2], index: 0, kind: input, shape index: {}]   ;;  %s2397_s1 = inlined_call_operand.hbm [shape: f32[128,256], index: 1, kind: input, shape index: {}]   ;;  %s2398_s2 = inlined_call_operand.hbm [shape: bf16[128,128], index: 2, kind: input, shape index: {}]   ;;  %s2399_s3 = inlined_call_operand.hbm [shape: bf16[512,256], index: 3, kind: input, shape index: {}]   ;;  %s2400_s4 = inlined_call_operand.hbm [shape: bf16[128,256], index: 4, kind: output, shape index: {}]  }
   0x1   :  { %s1733_s17 = scalar_lea.hbm %s2396_s0, 16 }
   0x2   :  { %p1734_p0 = scmp.ne.s32.totalorder %s2396_s0, %s1733_s17  ;;  %p1737_p1 = scmp.lt.u32.totalorder %s1733_s17, %s2396_s0 }
   0x4   :  { %p1739_p2 = pnand %p1737_p1, %p1734_p0 }
   0x6   :  { %1742 = shalt.err (!%p1739_p2)  }
   0x7   :  { %s1905_s22 = smov [#allocation3]  }
   0x8   :  { %10 = dma.hbm_to_smem %s2396_s0, 16, %s1905_s22, [#allocation2] }
   0x9   :  { %1871 = dma.done.wait [#allocation2], 16 }
   0xa   :  { %1872 = vsyncadd [#allocation2], 4294967280 }
   0xb   :  { %12 = sfence }
   0xc   :  { %13 = vsyncpa [#allocation5], 0 }
   0xd   :  { %14 = vsyncpa [#allocation8], 0 }
   0xe   :  { %15 = vsyncpa [#allocation6], 0  ;;  %s1956_s25 = smov 0   ;;  %s1958_s26 = smov 0  }
   0xf   :  { %s1960_s27 = smov 0   ;;  %s1962_s28 = smov 0  }
  0x10 LB: > { %s1975_s0 = sadd.s32 4294967295, %s1903_s28   ;;  %s1978_s29 = sadd.s32 1, %s1903_s28   ;;  %s1903_s28 = sphi %s1962_s28, %s2421_s28   ;;  %s1899_s27 = sphi %s1960_s27, %s2420_s27   ;;  %s1895_s26 = sphi %s1958_s26, %s2419_s26   ;;  %s1891_s25 = sphi %s1956_s25, %s2418_s25  }
  0x11   : > { %s67_s30 = ssub.s32 %s1903_s28, %s1978_s29  ;;  %s70_s5 = sadd.s32 1, %s1899_s27 }
  0x12   : > { %p68_p3 = scmp.eq.s32.totalorder %s67_s30, 0  ;;  %p77_p4 = scmp.ne.s32.totalorder %s1899_s27, %s1895_s26 }
  0x13   : > { %p78_p5 = scmp.eq.s32.totalorder %s1903_s28, 0  ;;  %p83_p6 = scmp.ne.s32.totalorder %s1895_s26, %s1891_s25 }
  0x14   : > { %s1988_s6 = scalar_select %p68_p3, %s1899_s27, %s70_s5  }
  0x15   : > { %p1990_p7 = por %p78_p5, %p77_p4  ;;  %p2401_p8 = scmp.eq.s32.totalorder %s1975_s0, 0 }
  0x16   : > { %p1405_p9 = scmp.ge.s32.totalorder %s1903_s28, 1  ;;  %p115_p10 = scmp.lt.s32.totalorder %s1903_s28, 3 }
  0x17   : > { %p1999_p11 = por %p2401_p8, %p83_p6  ;;  %s1906_s10 = smov [#allocation4]  }
  0x18   : > { %p2004_p13 = pnand %p1405_p9, %p115_p10  ;;  %s127_s11 = sshll.u32 %s1906_s10, 4  ;;  %s128_s11 = int_to_ptr.vmem [resolvable:$true] %s127_s11 }
  0x19   : > { %s2406_s8 = scalar_select %p1999_p11, 1, 0 }
  0x1a   : > { %s2407_s9 = scalar_select %p2004_p13, 1, 0 }
  0x1b   : > { %p1590_p0 = pneg %p2004_p13  ;;  %p1603_p2 = scmp.lt.s32.totalorder %s1903_s28, 2 }
  0x1c   : > { %s1743_s16 = scalar_lea.hbm %s2397_s1, 4096 }
  0x1d   : > { %p2012_p1 = pnand %p1590_p0, %p2401_p8  ;;  %p2019_p3 = pnand %p1603_p2, %p1990_p7 }
  0x1e   : > { %p1744_p4 = scmp.ne.s32.totalorder %s2397_s1, %s1743_s16  ;;  %p1750_p7 = scmp.lt.u32.totalorder %s1743_s16, %s2397_s1 }
  0x1f   : > { %s2409_s13 = scalar_select %p2019_p3, 1, 0 }
  0x20   : > { %p1745_p5 = pneg %p2012_p1 }
  0x22   : > { %p1746_p6 = pnand %p1745_p5, %p1744_p4 }
  0x24   : > { %p1747_p9 = pneg %p1746_p6 }
  0x26   : > { %p1752_p10 = pnand %p1750_p7, %p1747_p9 }
  0x28   : > { %1755 = shalt.err (!%p1752_p10)
}
  0x29   : > { %s1756_s21 = scalar_lea.vmem %s128_s11, 4096  ;;  %p1764_p8 = scmp.lt.s32.totalorder %s128_s11, %s128_s11 }
  0x2a   : > { %p1757_p0 = scmp.ne.s32.totalorder %s128_s11, %s1756_s21  ;;  %p1765_p11 = scmp.lt.s32.totalorder %s1756_s21, %s1756_s21 }
  0x2c   : > { %p1759_p2 = pnand %p1757_p0, %p1745_p5  ;;  %p1766_p13 = por %p1765_p11, %p1764_p8 }
  0x2e   : > { %p1760_p12 = pneg %p1759_p2 }
  0x30   : > { %p1767_p3 = pnand %p1766_p13, %p1760_p12 }
  0x32   : > { %1770 = shalt.err (!%p1767_p3)
}
  0x33   : > { %s1907_s22 = smov 256   ;;  %s1908_s23 = smov 16  }
  0x34   : > { %1593 = dma.hbm_to_vmem [thread:$0]  (!%p2012_p1), %s2397_s1, 4096, %s128_s11, [#allocation5], %s1907_s22, %s1907_s22, %s1908_s23  }
  0x35   : > { %s1909_s30 = smov [#allocation7]   ;;  %s1771_s14 = scalar_lea.hbm %s2398_s2, 1024 }
  0x36   : > { %s140_s5 = sshll.u32 %s1909_s30, 4  ;;  %p1772_p8 = scmp.ne.s32.totalorder %s2398_s2, %s1771_s14  ;;  %s141_s5 = int_to_ptr.vmem [resolvable:$true] %s140_s5 }
  0x37   : > { %p1778_p13 = scmp.lt.u32.totalorder %s1771_s14, %s2398_s2 }
  0x38   : > { %p1774_p11 = pnand %p1772_p8, %p1745_p5 }
  0x3a   : > { %p1775_p12 = pneg %p1774_p11 }
  0x3c   : > { %p1780_p3 = pnand %p1778_p13, %p1775_p12 }
  0x3e   : > { %1783 = shalt.err (!%p1780_p3)
}
  0x3f   : > { %s1784_s11 = scalar_lea.vmem %s141_s5, 1024  ;;  %p1792_p7 = scmp.lt.s32.totalorder %s141_s5, %s141_s5 }
  0x40   : > { %p1785_p4 = scmp.ne.s32.totalorder %s141_s5, %s1784_s11  ;;  %p1793_p10 = scmp.lt.s32.totalorder %s1784_s11, %s1784_s11 }
  0x42   : > { %p1787_p6 = pnand %p1785_p4, %p1745_p5  ;;  %p1794_p0 = por %p1793_p10, %p1792_p7 }
  0x44   : > { %p1788_p9 = pneg %p1787_p6 }
  0x46   : > { %p1795_p2 = pnand %p1794_p0, %p1788_p9 }
  0x48   : > { %1798 = shalt.err (!%p1795_p2)
}
  0x49   : > { %s1910_s19 = smov 64   ;;  %s1911_s20 = smov 4  }
  0x4a   : > { %1596 = dma.hbm_to_vmem [thread:$0]  (!%p2012_p1), %s2398_s2, 1024, %s141_s5, [#allocation8], %s1910_s19, %s1910_s19, %s1911_s20  }
  0x4b   : > { %s154_s23 = sand.u32 1, %s1903_s28   ;;  %s156_s24 = sand.u32 1, %s1899_s27  }
  0x4c   : > { %s1409_s25 = sshll.u32 %s156_s24, 8  ;;  %s1511_s30 = sshll.u32 %s1903_s28, 12 }
  0x4d   : > { %s2071_s14 = scalar_lea.hbm %s2399_s3, %s1511_s30  ;;  %s158_s15 = scalar_lea.vmem [#allocation9], %s1409_s25 }
  0x4e   : > { %s166_s16 = sshll.u32 %s158_s15, 4  ;;  %s2075_s12 = scalar_lea.sflag [#allocation5], %s154_s23  ;;  %s2073_s16 = int_to_ptr.vmem [resolvable:$true] %s166_s16 }
  0x4f   : > { %s1799_s5 = scalar_lea.hbm %s2071_s14, 4096  ;;  %p2410_p5 = scmp.ne.s32.totalorder %s2409_s13, 0 }
  0x50   : > { %p1800_p1 = scmp.ne.s32.totalorder %s2071_s14, %s1799_s5  ;;  %s1804_s18 = scalar_lea.hbm %s2399_s3, 8192 }
  0x51   : > { %p1801_p8 = pneg %p2410_p5  ;;  %p1805_p13 = scmp.lt.u32.totalorder %s2071_s14, %s2399_s3 }
  0x52   : > { %p1806_p3 = scmp.lt.u32.totalorder %s1804_s18, %s1799_s5  ;;  %p1808_p6 = scmp.lt.u32.totalorder %s1799_s5, %s2071_s14 }
  0x53   : > { %p1802_p11 = pnand %p1801_p8, %p1800_p1 }
  0x54   : > { %p1807_p4 = por %p1806_p3, %p1805_p13 }
  0x55   : > { %p1803_p12 = pneg %p1802_p11 }
  0x56   : > { %p1809_p9 = por %p1808_p6, %p1807_p4 }
  0x58   : > { %p1810_p7 = pnand %p1809_p9, %p1803_p12 }
  0x5a   : > { %1813 = shalt.err (!%p1810_p7)
}
  0x5b   : > { %s1814_s20 = scalar_lea.vmem %s2073_s16, 4096  ;;  %s1912_s21 = smov [#allocation9]  }
  0x5c   : > { %p1815_p10 = scmp.ne.s32.totalorder %s2073_s16, %s1814_s20  ;;  %s1819_s22 = sshll.u32 %s1912_s21, 4  ;;  %s1820_s22 = int_to_ptr.vmem [resolvable:$false] %s1819_s22 }
  0x5d   : > { %s1821_s23 = scalar_lea.vmem %s1820_s22, 8192  ;;  %p1822_p1 = scmp.lt.s32.totalorder %s2073_s16, %s1820_s22 }
  0x5e   : > { %p1817_p0 = pnand %p1815_p10, %p1801_p8  ;;  %p1823_p11 = scmp.lt.s32.totalorder %s1821_s23, %s1814_s20 }
  0x60   : > { %p1818_p2 = pneg %p1817_p0  ;;  %p1824_p13 = por %p1823_p11, %p1822_p1 }
  0x62   : > { %p1825_p3 = pnand %p1824_p13, %p1818_p2 }
  0x64   : > { %1828 = shalt.err (!%p1825_p3)
}
  0x65   : > { %s1913_s24 = smov 128   ;;  %s1914_s25 = smov 8  }
  0x66   : > { %1600 = dma.hbm_to_vmem [thread:$0]  (!%p2410_p5), %s2071_s14, 4096, %s2073_s16, %s2075_s12, %s1913_s24, %s1913_s24, %s1914_s25  }
  0x67   : > { %p2411_p8 = scmp.ne.s32.totalorder %s2407_s9, 0 }
  0x68   : > { %p2412_p12 = scmp.eq.s32.totalorder (!%p2411_p8), %s1975_s0, 0 }
  0x69   : > { %178 = sbr.rel (%p2411_p8) target bundleno = 691 (0x2b3), region = 32 }
  0x70   : > { %1874 = dma.done.wait (%p2412_p12), [#allocation5], 4096   ;;  %p2413_p4 = pmov %p2412_p12 }
  0x72   : > { %1876 = vsyncadd (%p2413_p4), [#allocation5], 4294963200  ;;  %p2414_p6 = pmov %p2413_p4 }
  0x73   : > { %p2415_p9 = pmov %p2413_p4 }
  0x74   : > { %1878 = dma.done.wait (%p2414_p6), [#allocation8], 1024  }
  0x75   : > { %1880 = vsyncadd (%p2415_p9), [#allocation8], 4294966272  ;;  %s188_s13 = sand.u32 1, %s1975_s0   ;;  %s190_s30 = sand.u32 1, %s1895_s26  }
  0x76   : > { %s1416_s7 = sshll.u32 %s190_s30, 8  ;;  %s189_s9 = scalar_lea.sflag [#allocation5], %s188_s13 }
  0x77   : > { %s2115_s10 = scalar_lea.vmem [#allocation9], %s1416_s7  ;;  %p2416_p5 = scmp.ne.s32.totalorder %s2406_s8, 0 }
  0x79   : > { %1882 = dma.done.wait (%p2416_p5), %s189_s9, 4096  }
  0x7a   : > { %1884 = vsyncadd (%p2416_p5), %s189_s9, 4294963200  ;;  %p2417_p7 = scmp.ne.s32.totalorder %s1975_s0, 0 }
  0x7b   : > { %v216_v0 = vld [vmem:[#allocation4] sm:$0xff] (!%p2417_p7)  ;;  %v217_v1 = vld [vmem:[#allocation4 + $0x8] sm:$0xff] (!%p2417_p7)  ;;  %v218_v2 = vld [vmem:[#allocation4 + $0x10] sm:$0xff] (!%p2417_p7) }
  0x7c   : > { %215 = sbr.rel (%p2417_p7) target bundleno = 138 (0x8a), region = 48  ;;  %v1512_v3 = vpack.c.bf16 (!%p2417_p7), %v217_v1, %v216_v0  ;;  %v219_v4 = vld [vmem:[#allocation4 + $0x18] sm:$0xff] (!%p2417_p7)  ;;  %v220_v5 = vld [vmem:[#allocation4 + $0x20] sm:$0xff] (!%p2417_p7)  ;;  %v221_v6 = vld [vmem:[#allocation4 + $0x28] sm:$0xff] (!%p2417_p7) }
  0x7d   : > { %v1513_v7 = vpack.c.bf16 (!%p2417_p7), %v219_v4, %v218_v2  ;;  %v1514_v8 = vpack.c.bf16 (!%p2417_p7), %v221_v6, %v220_v5  ;;  %v222_v9 = vld [vmem:[#allocation4 + $0x30] sm:$0xff] (!%p2417_p7)  ;;  %v223_v10 = vld [vmem:[#allocation4 + $0x38] sm:$0xff] (!%p2417_p7)  ;;  %v224_v11 = vld [vmem:[#allocation4 + $0x40] sm:$0xff] (!%p2417_p7) }
  0x7e   : > { %344 = vst [vmem:[#allocation10] sm:$0xff] (!%p2417_p7), %v1512_v3  ;;  %v1515_v12 = vpack.c.bf16 (!%p2417_p7), %v223_v10, %v222_v9  ;;  %v225_v13 = vld [vmem:[#allocation4 + $0x48] sm:$0xff] (!%p2417_p7)  ;;  %v226_v14 = vld [vmem:[#allocation4 + $0x50] sm:$0xff] (!%p2417_p7)  ;;  %v227_v15 = vld [vmem:[#allocation4 + $0x58] sm:$0xff] (!%p2417_p7) }
  0x7f   : > { %345 = vst [vmem:[#allocation10 + $0x8] sm:$0xff] (!%p2417_p7), %v1513_v7  ;;  %346 = vst [vmem:[#allocation10 + $0x10] sm:$0xff] (!%p2417_p7), %v1514_v8  ;;  %v1516_v16 = vpack.c.bf16 (!%p2417_p7), %v225_v13, %v224_v11  ;;  %v1517_v17 = vpack.c.bf16 (!%p2417_p7), %v227_v15, %v226_v14  ;;  %v228_v18 = vld [vmem:[#allocation4 + $0x60] sm:$0xff] (!%p2417_p7)  ;;  %v229_v19 = vld [vmem:[#allocation4 + $0x68] sm:$0xff] (!%p2417_p7) }
  0x80   : > { %v230_v20 = vld [vmem:[#allocation4 + $0x70] sm:$0xff] (!%p2417_p7)  ;;  %347 = vst [vmem:[#allocation10 + $0x18] sm:$0xff] (!%p2417_p7), %v1515_v12  ;;  %v1518_v21 = vpack.c.bf16 (!%p2417_p7), %v229_v19, %v228_v18  ;;  %v231_v22 = vld [vmem:[#allocation4 + $0x78] sm:$0xff] (!%p2417_p7)  ;;  %v232_v23 = vld [vmem:[#allocation4 + $0x80] sm:$0xff] (!%p2417_p7) }
  0x81   : > { %v233_v24 = vld [vmem:[#allocation4 + $0x88] sm:$0xff] (!%p2417_p7)  ;;  %348 = vst [vmem:[#allocation10 + $0x20] sm:$0xff] (!%p2417_p7), %v1516_v16  ;;  %349 = vst [vmem:[#allocation10 + $0x28] sm:$0xff] (!%p2417_p7), %v1517_v17  ;;  %v1519_v25 = vpack.c.bf16 (!%p2417_p7), %v231_v22, %v230_v20  ;;  %v234_v27 = vld [vmem:[#allocation4 + $0x90] sm:$0xff] (!%p2417_p7) }
  0x82   : > { %v1520_v26 = vpack.c.bf16 (!%p2417_p7), %v233_v24, %v232_v23  ;;  %v235_v28 = vld [vmem:[#allocation4 + $0x98] sm:$0xff] (!%p2417_p7)  ;;  %v236_v29 = vld [vmem:[#allocation4 + $0xa0] sm:$0xff] (!%p2417_p7)  ;;  %350 = vst [vmem:[#allocation10 + $0x30] sm:$0xff] (!%p2417_p7), %v1518_v21  ;;  %v237_v31 = vld [vmem:[#allocation4 + $0xa8] sm:$0xff] (!%p2417_p7) }
  0x83   : > { %v1521_v30 = vpack.c.bf16 %v235_v28, %v234_v27  ;;  %v238_v32 = vld [vmem:[#allocation4 + $0xb0] sm:$0xff]  ;;  %v239_v33 = vld [vmem:[#allocation4 + $0xb8] sm:$0xff]  ;;  %351 = vst [vmem:[#allocation10 + $0x38] sm:$0xff] %v1519_v25  ;;  %v1522_v34 = vpack.c.bf16 %v237_v31, %v236_v29  ;;  %v240_v36 = vld [vmem:[#allocation4 + $0xc0] sm:$0xff] }
  0x84   : > { %352 = vst [vmem:[#allocation10 + $0x40] sm:$0xff] %v1520_v26  ;;  %v1523_v35 = vpack.c.bf16 %v239_v33, %v238_v32  ;;  %v241_v37 = vld [vmem:[#allocation4 + $0xc8] sm:$0xff]  ;;  %v242_v38 = vld [vmem:[#allocation4 + $0xd0] sm:$0xff]  ;;  %v243_v40 = vld [vmem:[#allocation4 + $0xd8] sm:$0xff] }
  0x85   : > { %353 = vst [vmem:[#allocation10 + $0x48] sm:$0xff] %v1521_v30  ;;  %v1524_v39 = vpack.c.bf16 %v241_v37, %v240_v36  ;;  %v244_v41 = vld [vmem:[#allocation4 + $0xe0] sm:$0xff]  ;;  %v245_v42 = vld [vmem:[#allocation4 + $0xe8] sm:$0xff]  ;;  %354 = vst [vmem:[#allocation10 + $0x50] sm:$0xff] %v1522_v34  ;;  %v1525_v43 = vpack.c.bf16 %v243_v40, %v242_v38 }
  0x86   : > { %355 = vst [vmem:[#allocation10 + $0x58] sm:$0xff] %v1523_v35  ;;  %v1526_v44 = vpack.c.bf16 %v245_v42, %v244_v41  ;;  %v246_v45 = vld [vmem:[#allocation4 + $0xf0] sm:$0xff]  ;;  %v247_v46 = vld [vmem:[#allocation4 + $0xf8] sm:$0xff] }
  0x87   : > { %356 = vst [vmem:[#allocation10 + $0x60] sm:$0xff] %v1524_v39  ;;  %v1527_v47 = vpack.c.bf16 %v247_v46, %v246_v45  ;;  %357 = vst [vmem:[#allocation10 + $0x68] sm:$0xff] %v1525_v43 }
  0x88   : > { %358 = vst [vmem:[#allocation10 + $0x70] sm:$0xff] %v1526_v44 }
  0x89   : > { %359 = vst [vmem:[#allocation10 + $0x78] sm:$0xff] %v1527_v47 }
  0x8a PF: > { %v1915_v50 = vmov 0   ;;  %v1687_v62 = vld [vmem:[%s2115_s10 + $0x4] ss:$8 sps:$4 sm:$0xff]   ;;  %v1685_v63 = vld [vmem:[%s2115_s10] ss:$8 sps:$4 sm:$0xff]   ;;  %v1679_v18 = vld [vmem:[#allocation7 + $0x10] sm:$0xff]  }
  0x8b   : > { %553 = vmatprep.mubr.bf16.mxu0 %v1915_v50  ;;  %v1690_v0 = vld [vmem:[%s2115_s10 + $0x14] ss:$8 sps:$4 sm:$0xff]   ;;  %1544 = vmatprep.subr.bf16.mxu1 %v1687_v62  ;;  %v1688_v3 = vld [vmem:[%s2115_s10 + $0x10] ss:$8 sps:$4 sm:$0xff]   ;;  %v1693_v4 = vld [vmem:[%s2115_s10 + $0x24] ss:$8 sps:$4 sm:$0xff]  }
  0x8c   : > { %v1665_v57 = vld [vmem:[#allocation10 + $0x44] ss:$8 sps:$4 sm:$0xff]   ;;  %v1667_v58 = vld [vmem:[#allocation10 + $0x40] ss:$8 sps:$4 sm:$0xff]   ;;  %1560 = vmatpush1.bf16.msra.mxu1 %v1685_v63  ;;  %v1696_v7 = vld [vmem:[%s2115_s10 + $0x34] ss:$8 sps:$4 sm:$0xff]  }
  0x8d   : > { %v1653_v48 = vld [vmem:[#allocation10 + $0x4] ss:$8 sps:$4 sm:$0xff]   ;;  %v1655_v49 = vld [vmem:[#allocation10] ss:$8 sps:$4 sm:$0xff]   ;;  %v1668_v59 = vld [vmem:[#allocation10 + $0x54] ss:$8 sps:$4 sm:$0xff]   ;;  %1545 = vmatprep.subr.bf16.mxu1 %v1690_v0 }
  0x8e   : > { %521 = vmatprep.subr.bf16.mxu0 %v1653_v48  ;;  %v1656_v51 = vld [vmem:[#allocation10 + $0x14] ss:$8 sps:$4 sm:$0xff]   ;;  %v1658_v52 = vld [vmem:[#allocation10 + $0x10] ss:$8 sps:$4 sm:$0xff]   ;;  %v1671_v61 = vld [vmem:[#allocation10 + $0x64] ss:$8 sps:$4 sm:$0xff]  }
  0x8f   : > { %522 = vmatpush1.bf16.msra.mxu0 %v1655_v49  ;;  %v1659_v53 = vld [vmem:[#allocation10 + $0x24] ss:$8 sps:$4 sm:$0xff]   ;;  %v1661_v54 = vld [vmem:[#allocation10 + $0x20] ss:$8 sps:$4 sm:$0xff]   ;;  %v1670_v60 = vld [vmem:[#allocation10 + $0x50] ss:$8 sps:$4 sm:$0xff]  }
  0x90   : > { %523 = vmatprep.subr.bf16.mxu0 %v1656_v51  ;;  %v1673_v1 = vld [vmem:[#allocation10 + $0x60] ss:$8 sps:$4 sm:$0xff]   ;;  %v1674_v2 = vld [vmem:[#allocation10 + $0x74] ss:$8 sps:$4 sm:$0xff]   ;;  %1561 = vmatpush1.bf16.msra.mxu1 %v1688_v3  ;;  %v1676_v5 = vld [vmem:[#allocation10 + $0x70] ss:$8 sps:$4 sm:$0xff]  }
  0x91   : > { %v1662_v55 = vld [vmem:[#allocation10 + $0x34] ss:$8 sps:$4 sm:$0xff]   ;;  %v1664_v56 = vld [vmem:[#allocation10 + $0x30] ss:$8 sps:$4 sm:$0xff]   ;;  %1546 = vmatprep.subr.bf16.mxu1 %v1693_v4  ;;  %v1691_v6 = vld [vmem:[%s2115_s10 + $0x20] ss:$8 sps:$4 sm:$0xff]  }
  0x92   : > { %v1677_v8 = vld [vmem:[#allocation7] sm:$0xff]   ;;  %v1694_v9 = vld [vmem:[%s2115_s10 + $0x30] ss:$8 sps:$4 sm:$0xff]   ;;  %v1702_v12 = vld [vmem:[%s2115_s10 + $0x54] ss:$8 sps:$4 sm:$0xff]   ;;  %s360_s8 = sld [smem:[#allocation3 + %s1975_s0]] }
  0x93   : > { %524 = vmatpush1.bf16.msra.mxu0 %v1658_v52  ;;  %v1699_v10 = vld [vmem:[%s2115_s10 + $0x44] ss:$8 sps:$4 sm:$0xff]   ;;  %v1697_v11 = vld [vmem:[%s2115_s10 + $0x40] ss:$8 sps:$4 sm:$0xff]   ;;  %v1700_v14 = vld [vmem:[%s2115_s10 + $0x50] ss:$8 sps:$4 sm:$0xff]  }
  0x94   : > { %525 = vmatprep.subr.bf16.mxu0 %v1659_v53  ;;  %1562 = vmatpush1.bf16.msra.mxu1 %v1691_v6  ;;  %v1678_v13 = vld [vmem:[#allocation7 + $0x8] sm:$0xff]   ;;  %v1708_v17 = vld [vmem:[%s2115_s10 + $0x74] ss:$8 sps:$4 sm:$0xff]   ;;  %v1706_v19 = vld [vmem:[%s2115_s10 + $0x70] ss:$8 sps:$4 sm:$0xff]   ;;  %s1916_s15 = smov [#allocation10]  }
  0x95   : > { %1547 = vmatprep.subr.bf16.mxu1 %v1696_v7  ;;  %v1705_v15 = vld [vmem:[%s2115_s10 + $0x64] ss:$8 sps:$4 sm:$0xff]   ;;  %v1703_v16 = vld [vmem:[%s2115_s10 + $0x60] ss:$8 sps:$4 sm:$0xff]   ;;  %v1714_v22 = vld [vmem:[%s2115_s10 + $0x94] ss:$8 sps:$4 sm:$0xff]  }
  0x96   : > { %v1711_v20 = vld [vmem:[%s2115_s10 + $0x84] ss:$8 sps:$4 sm:$0xff]   ;;  %v1709_v21 = vld [vmem:[%s2115_s10 + $0x80] ss:$8 sps:$4 sm:$0xff]   ;;  %v1680_v23 = vld [vmem:[#allocation7 + $0x18] sm:$0xff]   ;;  %s1332_s16 = sshll.u32 %s1916_s15, 4  ;;  %s1333_s16 = int_to_ptr.vmem [resolvable:$true] %s1332_s16 }
  0x97   : > { %526 = vmatpush1.bf16.msra.mxu0 %v1661_v54  ;;  %v1712_v24 = vld [vmem:[%s2115_s10 + $0x90] ss:$8 sps:$4 sm:$0xff]   ;;  %v1717_v25 = vld [vmem:[%s2115_s10 + $0xa4] ss:$8 sps:$4 sm:$0xff]   ;;  %v1715_v26 = vld [vmem:[%s2115_s10 + $0xa0] ss:$8 sps:$4 sm:$0xff]   ;;  %p1836_p11 = scmp.lt.s32.totalorder %s1333_s16, %s1333_s16 }
  0x98   : > { %527 = vmatprep.subr.bf16.mxu0 %v1662_v55  ;;  %1563 = vmatpush1.bf16.msra.mxu1 %v1694_v9  ;;  %v1720_v27 = vld [vmem:[%s2115_s10 + $0xb4] ss:$8 sps:$4 sm:$0xff]   ;;  %v1681_v28 = vld [vmem:[#allocation7 + $0x20] sm:$0xff]   ;;  %v1718_v29 = vld [vmem:[%s2115_s10 + $0xb0] ss:$8 sps:$4 sm:$0xff]   ;;  %s1083_s14 = ssub.f32 1.0, %s360_s8 }
  0x99   : > { %1548 = vmatprep.subr.bf16.mxu1 %v1699_v10  ;;  %v1723_v30 = vld [vmem:[%s2115_s10 + $0xc4] ss:$8 sps:$4 sm:$0xff]   ;;  %v1721_v31 = vld [vmem:[%s2115_s10 + $0xc0] ss:$8 sps:$4 sm:$0xff]   ;;  %v1726_v32 = vld [vmem:[%s2115_s10 + $0xd4] ss:$8 sps:$4 sm:$0xff]  }
  0x9a   : > { %v1682_v33 = vld [vmem:[#allocation7 + $0x28] sm:$0xff]   ;;  %v1724_v34 = vld [vmem:[%s2115_s10 + $0xd0] ss:$8 sps:$4 sm:$0xff]   ;;  %v1732_v39 = vld [vmem:[%s2115_s10 + $0xf4] ss:$8 sps:$4 sm:$0xff]   ;;  %p1606_p10 = scmp.eq.s32.totalorder %s1975_s0, 1 }
  0x9b   : > { %528 = vmatpush1.bf16.msra.mxu0 %v1664_v56  ;;  %v1683_v35 = vld [vmem:[#allocation7 + $0x30] sm:$0xff]   ;;  %v1684_v36 = vld [vmem:[#allocation7 + $0x38] sm:$0xff]   ;;  %v1729_v37 = vld [vmem:[%s2115_s10 + $0xe4] ss:$8 sps:$4 sm:$0xff]   ;;  %s1829_s12 = scalar_lea.vmem %s1333_s16, 2048 }
  0x9c   : > { %529 = vmatprep.subr.bf16.mxu0 %v1665_v57  ;;  %1564 = vmatpush1.bf16.msra.mxu1 %v1697_v11  ;;  %v1727_v38 = vld [vmem:[%s2115_s10 + $0xe0] ss:$8 sps:$4 sm:$0xff]   ;;  %v1730_v40 = vld [vmem:[%s2115_s10 + $0xf0] ss:$8 sps:$4 sm:$0xff]   ;;  %p1830_p0 = scmp.ne.s32.totalorder %s1333_s16, %s1829_s12  ;;  %p1837_p13 = scmp.lt.s32.totalorder %s1829_s12, %s1829_s12 }
  0x9d   : > { %1549 = vmatprep.subr.bf16.mxu1 %v1702_v12  ;;  %v666_v41 = vld [vmem:[#allocation4] sm:$0xff]  ;;  %v667_v42 = vld [vmem:[#allocation4 + $0x8] sm:$0xff]  ;;  %v668_v43 = vld [vmem:[#allocation4 + $0x10] sm:$0xff] }
  0x9e   : > { %v669_v44 = vld [vmem:[#allocation4 + $0x18] sm:$0xff]  ;;  %v698_v46 = vmul.f32 0.1, %v666_v41  ;;  %v699_v47 = vmul.f32 0.1, %v667_v42  ;;  %v680_v41 = vld [vmem:[#allocation4 + $0x70] sm:$0xff]  ;;  %p1831_p2 = pnand %p1830_p0, %p1606_p10  ;;  %p1838_p3 = por %p1837_p13, %p1836_p11 }
  0x9f   : > { %530 = vmatpush1.bf16.msra.mxu0 %v1667_v58  ;;  %v701_v53 = vmul.f32 0.1, %v669_v44  ;;  %v681_v44 = vld [vmem:[#allocation4 + $0x78] sm:$0xff] }
  0xa0   : > { %531 = vmatprep.subr.bf16.mxu0 %v1668_v59  ;;  %1565 = vmatpush1.bf16.msra.mxu1 %v1700_v14  ;;  %v670_v59 = vld [vmem:[#allocation4 + $0x20] sm:$0xff]  ;;  %p1832_p1 = pneg %p1831_p2 }
  0xa1   : > { %1550 = vmatprep.subr.bf16.mxu1 %v1705_v15 }
  0xa2   : > { %p1839_p8 = pnand %p1838_p3, %p1832_p1 }
  0xa3   : > { %532 = vmatpush1.bf16.msra.mxu0 %v1670_v60  ;;  %v671_v60 = vld [vmem:[#allocation4 + $0x28] sm:$0xff] }
  0xa4   : > { %533 = vmatprep.subr.bf16.mxu0 %v1671_v61  ;;  %1566 = vmatpush1.bf16.msra.mxu1 %v1703_v16 }
  0xa5   : > { %1551 = vmatprep.subr.bf16.mxu1 %v1708_v17 }
  0xa7   : > { %534 = vmatpush1.bf16.msra.mxu0 %v1673_v1  ;;  %v673_v1 = vld [vmem:[#allocation4 + $0x38] sm:$0xff] }
  0xa8   : > { %535 = vmatprep.subr.bf16.mxu0 %v1674_v2  ;;  %1567 = vmatpush1.bf16.msra.mxu1 %v1706_v19 }
  0xa9   : > { %1552 = vmatprep.subr.bf16.mxu1 %v1711_v20 }
  0xab   : > { %536 = vmatpush1.bf16.msra.mxu0 %v1676_v5 }
  0xac   : > { %970 = vmatprep.subr.bf16.mxu0 %v1687_v62  ;;  %1568 = vmatpush1.bf16.msra.mxu1 %v1709_v21 }
  0xad   : > { %1553 = vmatprep.subr.bf16.mxu1 %v1714_v22 }
  0xae   : > { %554 = vmatmul.mubr.bf16.vlgmr.msra.gmra.mrb[0].mxu0 %v1677_v8 }
  0xaf   : > { %563 = vmatprep.mubr.bf16.mxu0 %v1915_v50  ;;  %971 = vmatpush1.bf16.msra.mxu0 %v1685_v63  ;;  %v672_v63 = vld [vmem:[#allocation4 + $0x30] sm:$0xff] }
  0xb0   : > { %972 = vmatprep.subr.bf16.mxu0 %v1690_v0  ;;  %1569 = vmatpush1.bf16.msra.mxu1 %v1712_v24  ;;  %v704_v8 = vmul.f32 0.1, %v672_v63 }
  0xb1   : > { %1554 = vmatprep.subr.bf16.mxu1 %v1717_v25 }
  0xb3   : > { %973 = vmatpush1.bf16.msra.mxu0 %v1688_v3  ;;  %v702_v3 = vmul.f32 0.1, %v670_v59 }
  0xb4   : > { %974 = vmatprep.subr.bf16.mxu0 %v1693_v4  ;;  %1570 = vmatpush1.bf16.msra.mxu1 %v1715_v26  ;;  %v703_v4 = vmul.f32 0.1, %v671_v60 }
  0xb5   : > { %1555 = vmatprep.subr.bf16.mxu1 %v1720_v27 }
  0xb6   : > { %564 = vmatmul.mubr.bf16.gmra.mrb[4].mxu0 %v1678_v13 }
  0xb7   : > { %573 = vmatprep.mubr.bf16.mxu0 %v1915_v50  ;;  %975 = vmatpush1.bf16.msra.mxu0 %v1691_v6 }
  0xb8   : > { %976 = vmatprep.subr.bf16.mxu0 %v1696_v7  ;;  %1571 = vmatpush1.bf16.msra.mxu1 %v1718_v29 }
  0xb9   : > { %1556 = vmatprep.subr.bf16.mxu1 %v1723_v30 }
  0xbb   : > { %977 = vmatpush1.bf16.msra.mxu0 %v1694_v9 }
  0xbc   : > { %978 = vmatprep.subr.bf16.mxu0 %v1699_v10  ;;  %1572 = vmatpush1.bf16.msra.mxu1 %v1721_v31 }
  0xbd   : > { %1557 = vmatprep.subr.bf16.mxu1 %v1726_v32 }
  0xbe   : > { %574 = vmatmul.mubr.bf16.gmra.mrb[8].mxu0 %v1679_v18  ;;  %v675_v18 = vld [vmem:[#allocation4 + $0x48] sm:$0xff] }
  0xbf   : > { %583 = vmatprep.mubr.bf16.mxu0 %v1915_v50  ;;  %979 = vmatpush1.bf16.msra.mxu0 %v1697_v11  ;;  %v705_v11 = vmul.f32 0.1, %v673_v1  ;;  %v682_v1 = vld [vmem:[#allocation4 + $0x80] sm:$0xff] }
  0xc0   : > { %980 = vmatprep.subr.bf16.mxu0 %v1702_v12  ;;  %1573 = vmatpush1.bf16.msra.mxu1 %v1724_v34 }
  0xc1   : > { %1558 = vmatprep.subr.bf16.mxu1 %v1729_v37 }
  0xc3   : > { %981 = vmatpush1.bf16.msra.mxu0 %v1700_v14 }
  0xc4   : > { %982 = vmatprep.subr.bf16.mxu0 %v1705_v15  ;;  %1574 = vmatpush1.bf16.msra.mxu1 %v1727_v38 }
  0xc5   : > { %1559 = vmatprep.subr.bf16.mxu1 %v1732_v39 }
  0xc6   : > { %584 = vmatmul.mubr.bf16.gmra.mrb[12].mxu0 %v1680_v23  ;;  %v677_v23 = vld [vmem:[#allocation4 + $0x58] sm:$0xff] }
  0xc7   : > { %593 = vmatprep.mubr.bf16.mxu0 %v1915_v50  ;;  %983 = vmatpush1.bf16.msra.mxu0 %v1703_v16 }
  0xc8   : > { %984 = vmatprep.subr.bf16.mxu0 %v1708_v17  ;;  %1575 = vmatpush1.bf16.msra.mxu1 %v1730_v40  ;;  %v674_v17 = vld [vmem:[#allocation4 + $0x40] sm:$0xff] }
  0xcb   : > { %985 = vmatpush1.bf16.msra.mxu0 %v1706_v19 }
  0xcc   : > { %986 = vmatprep.subr.bf16.mxu0 %v1711_v20 }
  0xce   : > { %594 = vmatmul.mubr.bf16.gmra.mrb[16].mxu0 %v1681_v28 }
  0xcf   : > { %603 = vmatprep.mubr.bf16.mxu0 %v1915_v50  ;;  %987 = vmatpush1.bf16.msra.mxu0 %v1709_v21  ;;  %v676_v21 = vld [vmem:[#allocation4 + $0x50] sm:$0xff] }
  0xd0   : > { %988 = vmatprep.subr.bf16.mxu0 %v1714_v22 }
  0xd3   : > { %989 = vmatpush1.bf16.msra.mxu0 %v1712_v24 }
  0xd4   : > { %990 = vmatprep.subr.bf16.mxu0 %v1717_v25  ;;  %v706_v25 = vmul.f32 0.1, %v674_v17 }
  0xd6   : > { %604 = vmatmul.mubr.bf16.gmra.mrb[20].mxu0 %v1682_v33  ;;  %v709_v33 = vmul.f32 0.1, %v677_v23 }
  0xd7   : > { %613 = vmatprep.mubr.bf16.mxu0 %v1915_v50  ;;  %991 = vmatpush1.bf16.msra.mxu0 %v1715_v26 }
  0xd8   : > { %992 = vmatprep.subr.bf16.mxu0 %v1720_v27  ;;  %v707_v27 = vmul.f32 0.1, %v675_v18 }
  0xdb   : > { %993 = vmatpush1.bf16.msra.mxu0 %v1718_v29 }
  0xdc   : > { %994 = vmatprep.subr.bf16.mxu0 %v1723_v30  ;;  %v708_v30 = vmul.f32 0.1, %v676_v21 }
  0xde   : > { %614 = vmatmul.mubr.bf16.gmra.mrb[24].mxu0 %v1683_v35 }
  0xdf   : > { %623 = vmatprep.mubr.bf16.mxu0 %v1915_v50  ;;  %995 = vmatpush1.bf16.msra.mxu0 %v1721_v31  ;;  %v700_v50 = vmul.f32 0.1, %v668_v43 }
  0xe0   : > { %996 = vmatprep.subr.bf16.mxu0 %v1726_v32 }
  0xe3   : > { %997 = vmatpush1.bf16.msra.mxu0 %v1724_v34 }
  0xe4   : > { %998 = vmatprep.subr.bf16.mxu0 %v1729_v37 }
  0xe6   : > { %624 = vmatmul.mubr.bf16.gmra.mrb[28].mxu0 %v1684_v36 }
  0xe7   : > { %999 = vmatpush1.bf16.msra.mxu0 %v1727_v38 }
  0xe8   : > { %1000 = vmatprep.subr.bf16.mxu0 %v1732_v39  ;;  %v678_v39 = vld [vmem:[#allocation4 + $0x60] sm:$0xff] }
  0xeb   : > { %1001 = vmatpush1.bf16.msra.mxu0 %v1730_v40  ;;  %v679_v40 = vld [vmem:[#allocation4 + $0x68] sm:$0xff] }
 0x181   : > { %v555_v45 = vpop.f32.mrb[0].mxu0 }
 0x182   : > { %v634_v48 = vmul.f32 0.9, %v555_v45  ;;  %v557_v49 = vpop.f32.mrb[1].mxu0 }
 0x183   : > { %v635_v51 = vmul.f32 0.9, %v557_v49  ;;  %v559_v52 = vpop.f32.mrb[2].mxu0 }
 0x184   : > { %v636_v54 = vmul.f32 0.9, %v559_v52  ;;  %v561_v55 = vpop.f32.mrb[3].mxu0  ;;  %v2163_v57 = vadd.f32 %v698_v46, %v634_v48  ;;  %v711_v48 = vmul.f32 0.1, %v679_v40 }
 0x185   : > { %v637_v56 = vmul.f32 0.9, %v561_v55  ;;  %v2167_v61 = vadd.f32 %v699_v47, %v635_v51  ;;  %v710_v47 = vmul.f32 0.1, %v678_v39  ;;  %v712_v52 = vmul.f32 0.1, %v680_v41 }
 0x186   : > { %v2165_v58 = vadd.f32 %v700_v50, %v636_v54  ;;  %v713_v55 = vmul.f32 0.1, %v681_v44 }
 0x187   : > { %v2169_v62 = vadd.f32 %v701_v53, %v637_v56 }
 0x188   : > { %v762_v0 = vpack.c.bf16 %v2165_v58, %v2163_v57 }
 0x189   : > { %v565_v2 = vpop.f32.mrb[4].mxu0  ;;  %v763_v5 = vpack.c.bf16 %v2169_v62, %v2167_v61 }
 0x18a   : > { %v638_v6 = vmul.f32 0.9, %v565_v2  ;;  %v567_v7 = vpop.f32.mrb[5].mxu0  ;;  %v683_v2 = vld [vmem:[#allocation4 + $0x88] sm:$0xff] }
 0x18b   : > { %v639_v9 = vmul.f32 0.9, %v567_v7  ;;  %v569_v10 = vpop.f32.mrb[6].mxu0  ;;  %1002 = vmatprep.mubr.bf16.mxu0 %v763_v5  ;;  %v684_v5 = vld [vmem:[#allocation4 + $0x90] sm:$0xff] }
 0x18c   : > { %v640_v12 = vmul.f32 0.9, %v569_v10  ;;  %v571_v13 = vpop.f32.mrb[7].mxu0  ;;  %1003 = vmatmul.mubr.bf16.vlgmr.msra.gmra.mrb[32].mxu0 %v762_v0  ;;  %v2175_v15 = vadd.f32 %v702_v3, %v638_v6  ;;  %v685_v6 = vld [vmem:[#allocation4 + $0x98] sm:$0xff]  ;;  %v715_v10 = vmul.f32 0.1, %v683_v2 }
 0x18d   : > { %v641_v14 = vmul.f32 0.9, %v571_v13  ;;  %v2179_v19 = vadd.f32 %v703_v4, %v639_v9  ;;  %v714_v9 = vmul.f32 0.1, %v682_v1  ;;  %v717_v21 = vmul.f32 0.1, %v685_v6 }
 0x18e   : > { %v2177_v16 = vadd.f32 %v704_v8, %v640_v12 }
 0x18f   : > { %v2181_v20 = vadd.f32 %v705_v11, %v641_v14  ;;  %v716_v14 = vmul.f32 0.1, %v684_v5 }
 0x190   : > { %v764_v22 = vpack.c.bf16 %v2177_v16, %v2175_v15 }
 0x191   : > { %v575_v24 = vpop.f32.mrb[8].mxu0  ;;  %v765_v26 = vpack.c.bf16 %v2181_v20, %v2179_v19 }
 0x192   : > { %v642_v28 = vmul.f32 0.9, %v575_v24  ;;  %v577_v29 = vpop.f32.mrb[9].mxu0 }
 0x193   : > { %v643_v31 = vmul.f32 0.9, %v577_v29  ;;  %v579_v32 = vpop.f32.mrb[10].mxu0  ;;  %1012 = vmatprep.mubr.bf16.mxu0 %v765_v26 }
 0x194   : > { %v644_v34 = vmul.f32 0.9, %v579_v32  ;;  %v581_v35 = vpop.f32.mrb[11].mxu0  ;;  %1013 = vmatmul.mubr.bf16.gmra.mrb[36].mxu0 %v764_v22  ;;  %v2187_v37 = vadd.f32 %v706_v25, %v642_v28  ;;  %v687_v28 = vld [vmem:[#allocation4 + $0xa8] sm:$0xff]  ;;  %v689_v32 = vld [vmem:[#allocation4 + $0xb8] sm:$0xff] }
 0x195   : > { %v645_v36 = vmul.f32 0.9, %v581_v35  ;;  %v2191_v42 = vadd.f32 %v707_v27, %v643_v31  ;;  %v686_v27 = vld [vmem:[#allocation4 + $0xa0] sm:$0xff]  ;;  %v688_v31 = vld [vmem:[#allocation4 + $0xb0] sm:$0xff] }
 0x196   : > { %v2189_v38 = vadd.f32 %v708_v30, %v644_v34  ;;  %v718_v35 = vmul.f32 0.1, %v686_v27  ;;  %v720_v44 = vmul.f32 0.1, %v688_v31  ;;  %v696_v31 = vld [vmem:[#allocation4 + $0xf0] sm:$0xff] }
 0x197   : > { %v2193_v43 = vadd.f32 %v709_v33, %v645_v36  ;;  %v719_v36 = vmul.f32 0.1, %v687_v28 }
 0x198   : > { %v766_v45 = vpack.c.bf16 %v2189_v38, %v2187_v37 }
 0x199   : > { %v585_v46 = vpop.f32.mrb[12].mxu0  ;;  %v767_v49 = vpack.c.bf16 %v2193_v43, %v2191_v42 }
 0x19a   : > { %v646_v50 = vmul.f32 0.9, %v585_v46  ;;  %v587_v51 = vpop.f32.mrb[13].mxu0 }
 0x19b   : > { %v647_v53 = vmul.f32 0.9, %v587_v51  ;;  %v589_v54 = vpop.f32.mrb[14].mxu0  ;;  %1022 = vmatprep.mubr.bf16.mxu1 %v767_v49 }
 0x19c   : > { %v648_v56 = vmul.f32 0.9, %v589_v54  ;;  %v591_v59 = vpop.f32.mrb[15].mxu0  ;;  %1023 = vmatmul.mubr.bf16.vlgmr.msra.gmra.mrb[0].mxu1 %v766_v45  ;;  %v2199_v63 = vadd.f32 %v710_v47, %v646_v50  ;;  %v721_v47 = vmul.f32 0.1, %v689_v32  ;;  %v691_v54 = vld [vmem:[#allocation4 + $0xc8] sm:$0xff] }
 0x19d   : > { %v649_v60 = vmul.f32 0.9, %v591_v59  ;;  %v2203_v3 = vadd.f32 %v711_v48, %v647_v53  ;;  %v690_v53 = vld [vmem:[#allocation4 + $0xc0] sm:$0xff]  ;;  %v692_v59 = vld [vmem:[#allocation4 + $0xd0] sm:$0xff]  ;;  %v723_v6 = vmul.f32 0.1, %v691_v54 }
 0x19e   : > { %v2201_v0 = vadd.f32 %v712_v52, %v648_v56  ;;  %v722_v5 = vmul.f32 0.1, %v690_v53  ;;  %v697_v32 = vld [vmem:[#allocation4 + $0xf8] sm:$0xff] }
 0x19f   : > { %v2205_v4 = vadd.f32 %v713_v55, %v649_v60  ;;  %v693_v60 = vld [vmem:[#allocation4 + $0xd8] sm:$0xff] }
 0x1a0   : > { %v768_v7 = vpack.c.bf16 %v2201_v0, %v2199_v63 }
 0x1a1   : > { %v595_v8 = vpop.f32.mrb[16].mxu0  ;;  %v769_v11 = vpack.c.bf16 %v2205_v4, %v2203_v3 }
 0x1a2   : > { %v650_v12 = vmul.f32 0.9, %v595_v8  ;;  %v597_v13 = vpop.f32.mrb[17].mxu0 }
 0x1a3   : > { %v651_v17 = vmul.f32 0.9, %v597_v13  ;;  %v599_v18 = vpop.f32.mrb[18].mxu0  ;;  %1032 = vmatprep.mubr.bf16.mxu1 %v769_v11  ;;  %v725_v13 = vmul.f32 0.1, %v693_v60 }
 0x1a4   : > { %v652_v22 = vmul.f32 0.9, %v599_v18  ;;  %v601_v23 = vpop.f32.mrb[19].mxu0  ;;  %1033 = vmatmul.mubr.bf16.gmra.mrb[4].mxu1 %v768_v7  ;;  %v2211_v25 = vadd.f32 %v714_v9, %v650_v12 }
 0x1a5   : > { %v653_v24 = vmul.f32 0.9, %v601_v23  ;;  %v2215_v29 = vadd.f32 %v715_v10, %v651_v17  ;;  %v724_v10 = vmul.f32 0.1, %v692_v59  ;;  %v694_v23 = vld [vmem:[#allocation4 + $0xe0] sm:$0xff] }
 0x1a6   : > { %v2213_v26 = vadd.f32 %v716_v14, %v652_v22 }
 0x1a7   : > { %v2217_v30 = vadd.f32 %v717_v21, %v653_v24  ;;  %v695_v24 = vld [vmem:[#allocation4 + $0xe8] sm:$0xff] }
 0x1a8   : > { %v770_v33 = vpack.c.bf16 %v2213_v26, %v2211_v25 }
 0x1a9   : > { %v605_v34 = vpop.f32.mrb[20].mxu0  ;;  %v771_v39 = vpack.c.bf16 %v2217_v30, %v2215_v29 }
 0x1aa   : > { %v654_v40 = vmul.f32 0.9, %v605_v34  ;;  %v607_v41 = vpop.f32.mrb[21].mxu0 }
 0x1ab   : > { %v655_v45 = vmul.f32 0.9, %v607_v41  ;;  %v609_v46 = vpop.f32.mrb[22].mxu0  ;;  %1042 = vmatprep.mubr.bf16.mxu1 %v771_v39 }
 0x1ac   : > { %v656_v48 = vmul.f32 0.9, %v609_v46  ;;  %v611_v49 = vpop.f32.mrb[23].mxu0  ;;  %1043 = vmatmul.mubr.bf16.gmra.mrb[8].mxu1 %v770_v33  ;;  %v2223_v51 = vadd.f32 %v718_v35, %v654_v40  ;;  %v726_v35 = vmul.f32 0.1, %v694_v23 }
 0x1ad   : > { %v657_v50 = vmul.f32 0.9, %v611_v49  ;;  %v2227_v55 = vadd.f32 %v719_v36, %v655_v45  ;;  %v727_v36 = vmul.f32 0.1, %v695_v24 }
 0x1ae   : > { %v2225_v52 = vadd.f32 %v720_v44, %v656_v48  ;;  %v728_v44 = vmul.f32 0.1, %v696_v31 }
 0x1af   : > { %v2229_v56 = vadd.f32 %v721_v47, %v657_v50  ;;  %v729_v47 = vmul.f32 0.1, %v697_v32 }
 0x1b0   : > { %v772_v1 = vpack.c.bf16 %v2225_v52, %v2223_v51 }
 0x1b1   : > { %v615_v2 = vpop.f32.mrb[24].mxu0  ;;  %v773_v7 = vpack.c.bf16 %v2229_v56, %v2227_v55 }
 0x1b2   : > { %v658_v8 = vmul.f32 0.9, %v615_v2  ;;  %v617_v9 = vpop.f32.mrb[25].mxu0 }
 0x1b3   : > { %v659_v11 = vmul.f32 0.9, %v617_v9  ;;  %v619_v12 = vpop.f32.mrb[26].mxu0  ;;  %1052 = vmatprep.mubr.bf16.mxu1 %v773_v7 }
 0x1b4   : > { %v660_v14 = vmul.f32 0.9, %v619_v12  ;;  %v621_v17 = vpop.f32.mrb[27].mxu0  ;;  %1053 = vmatmul.mubr.bf16.gmra.mrb[12].mxu1 %v772_v1  ;;  %v2235_v21 = vadd.f32 %v722_v5, %v658_v8  ;;  %v2260_v5 = vstv %s1083_s14 }
 0x1b5   : > { %v661_v18 = vmul.f32 0.9, %v621_v17  ;;  %v2239_v27 = vadd.f32 %v723_v6, %v659_v11  ;;  %v2262_v6 = vstv %s360_s8  ;;  %v1085_v8 = vmul.f32 %v2260_v5, %v2163_v57 }
 0x1b6   : > { %v2237_v22 = vadd.f32 %v724_v10, %v660_v14  ;;  %v1086_v11 = vmul.f32 %v2260_v5, %v2167_v61  ;;  %v1087_v17 = vmul.f32 %v2260_v5, %v2165_v58  ;;  %v1088_v57 = vmul.f32 %v2260_v5, %v2169_v62 }
 0x1b7   : > { %v2241_v28 = vadd.f32 %v725_v13, %v661_v18  ;;  %v1089_v58 = vmul.f32 %v2260_v5, %v2175_v15  ;;  %v1090_v62 = vmul.f32 %v2260_v5, %v2179_v19 }
 0x1b8   : > { %v774_v33 = vpack.c.bf16 %v2237_v22, %v2235_v21 }
 0x1b9   : > { %v625_v34 = vpop.f32.mrb[28].mxu0  ;;  %v775_v39 = vpack.c.bf16 %v2241_v28, %v2239_v27 }
 0x1ba   : > { %v662_v40 = vmul.f32 0.9, %v625_v34  ;;  %v627_v41 = vpop.f32.mrb[29].mxu0 }
 0x1bb   : > { %v663_v45 = vmul.f32 0.9, %v627_v41  ;;  %v629_v46 = vpop.f32.mrb[30].mxu0  ;;  %1062 = vmatprep.mubr.bf16.mxu1 %v775_v39 }
 0x1bc   : > { %v664_v48 = vmul.f32 0.9, %v629_v46  ;;  %v631_v49 = vpop.f32.mrb[31].mxu0  ;;  %1063 = vmatmul.mubr.bf16.gmra.mrb[16].mxu1 %v774_v33  ;;  %v2247_v53 = vadd.f32 %v726_v35, %v662_v40 }
 0x1bd   : > { %v665_v50 = vmul.f32 0.9, %v631_v49  ;;  %v2251_v59 = vadd.f32 %v727_v36, %v663_v45  ;;  %v1091_v49 = vmul.f32 %v2260_v5, %v2177_v16  ;;  %v1093_v16 = vmul.f32 %v2260_v5, %v2187_v37 }
 0x1be   : > { %v2249_v54 = vadd.f32 %v728_v44, %v664_v48  ;;  %v1096_v37 = vmul.f32 %v2260_v5, %v2193_v43 }
 0x1bf   : > { %v2253_v60 = vadd.f32 %v729_v47, %v665_v50 }
 0x1c0   : > { %v776_v1 = vpack.c.bf16 %v2249_v54, %v2247_v53 }
 0x1c1   : > { %v777_v2 = vpack.c.bf16 %v2253_v60, %v2251_v59 }
 0x1c3   : > { %1072 = vmatprep.mubr.bf16.mxu1 %v777_v2  ;;  %v1092_v2 = vmul.f32 %v2260_v5, %v2181_v20 }
 0x1c4   : > { %1073 = vmatmul.mubr.bf16.gmra.mrb[20].mxu1 %v776_v1 }
 0x25f   : > { %v1004_v7 = vpop.f32.mrb[32].mxu0 }
 0x260   : > { %v1118_v9 = vmul.f32 %v2262_v6, %v1004_v7  ;;  %v1006_v10 = vpop.f32.mrb[33].mxu0 }
 0x261   : > { %v1119_v12 = vmul.f32 %v2262_v6, %v1006_v10  ;;  %v1008_v13 = vpop.f32.mrb[34].mxu0 }
 0x262   : > { %v1150_v14 = vadd.f32 %v1118_v9, %v1085_v8  ;;  %v1120_v18 = vmul.f32 %v2262_v6, %v1008_v13  ;;  %v1010_v23 = vpop.f32.mrb[35].mxu0 }
 0x263   : > { %v1151_v24 = vadd.f32 %v1119_v12, %v1086_v11  ;;  %v1121_v31 = vmul.f32 %v2262_v6, %v1010_v23  ;;  %v1094_v23 = vmul.f32 %v2260_v5, %v2191_v42 }
 0x264   : > { %v1182_v32 = vmax.f32 %v1150_v14, 0.0  ;;  %v1152_v33 = vadd.f32 %v1120_v18, %v1087_v17 }
 0x265   : > { %v1183_v34 = vmax.f32 %v1151_v24, 0.0  ;;  %v1153_v61 = vadd.f32 %v1121_v31, %v1088_v57 }
 0x266   : > { %v1184_v35 = vmax.f32 %v1152_v33, 0.0 }
 0x267   : > { %v1528_v36 = vpack.c.bf16 %v1183_v34, %v1182_v32  ;;  %v1185_v39 = vmax.f32 %v1153_v61, 0.0  ;;  %v1014_v40 = vpop.f32.mrb[36].mxu0  ;;  %v1095_v32 = vmul.f32 %v2260_v5, %v2189_v38  ;;  %v1097_v38 = vmul.f32 %v2260_v5, %v2199_v63 }
 0x268   : > { %v1122_v41 = vmul.f32 %v2262_v6, %v1014_v40  ;;  %v1016_v44 = vpop.f32.mrb[37].mxu0 }
 0x269   : > { %1310 = vst [vmem:[#allocation10] sm:$0xff] %v1528_v36  ;;  %v1529_v45 = vpack.c.bf16 %v1185_v39, %v1184_v35  ;;  %v1123_v46 = vmul.f32 %v2262_v6, %v1016_v44  ;;  %v1018_v47 = vpop.f32.mrb[38].mxu0 }
 0x26a   : > { %v1154_v48 = vadd.f32 %v1122_v41, %v1089_v58  ;;  %v1124_v50 = vmul.f32 %v2262_v6, %v1018_v47  ;;  %v1020_v1 = vpop.f32.mrb[39].mxu0  ;;  %v1098_v47 = vmul.f32 %v2260_v5, %v2203_v3 }
 0x26b   : > { %1311 = vst [vmem:[#allocation10 + $0x8] sm:$0xff] %v1529_v45  ;;  %v1155_v15 = vadd.f32 %v1123_v46, %v1090_v62  ;;  %v1125_v7 = vmul.f32 %v2262_v6, %v1020_v1  ;;  %v1099_v1 = vmul.f32 %v2260_v5, %v2201_v0  ;;  %v1101_v0 = vmul.f32 %v2260_v5, %v2211_v25 }
 0x26c   : > { %v1186_v8 = vmax.f32 %v1154_v48, 0.0  ;;  %v1156_v9 = vadd.f32 %v1124_v50, %v1091_v49 }
 0x26d   : > { %v1187_v19 = vmax.f32 %v1155_v15, 0.0  ;;  %v1157_v10 = vadd.f32 %v1125_v7, %v1092_v2  ;;  %v1100_v7 = vmul.f32 %v2260_v5, %v2205_v4  ;;  %v1102_v4 = vmul.f32 %v2260_v5, %v2215_v29 }
 0x26e   : > { %v1188_v11 = vmax.f32 %v1156_v9, 0.0 }
 0x26f   : > { %v1530_v12 = vpack.c.bf16 %v1187_v19, %v1186_v8  ;;  %v1189_v13 = vmax.f32 %v1157_v10, 0.0  ;;  %v1024_v14 = vpop.f32.mrb[0].mxu1 }
 0x270   : > { %v1126_v17 = vmul.f32 %v2262_v6, %v1024_v14  ;;  %v1026_v18 = vpop.f32.mrb[1].mxu1 }
 0x271   : > { %1312 = vst [vmem:[#allocation10 + $0x10] sm:$0xff] %v1530_v12  ;;  %v1531_v20 = vpack.c.bf16 %v1189_v13, %v1188_v11  ;;  %v1127_v24 = vmul.f32 %v2262_v6, %v1026_v18  ;;  %v1028_v57 = vpop.f32.mrb[2].mxu1 }
 0x272   : > { %v1158_v31 = vadd.f32 %v1126_v17, %v1093_v16  ;;  %v1128_v33 = vmul.f32 %v2262_v6, %v1028_v57  ;;  %v1030_v34 = vpop.f32.mrb[3].mxu1  ;;  %v1103_v57 = vmul.f32 %v2260_v5, %v2213_v26  ;;  %v1105_v26 = vmul.f32 %v2260_v5, %v2223_v51 }
 0x273   : > { %1313 = vst [vmem:[#allocation10 + $0x18] sm:$0xff] %v1531_v20  ;;  %v1159_v61 = vadd.f32 %v1127_v24, %v1094_v23  ;;  %v1129_v35 = vmul.f32 %v2262_v6, %v1030_v34 }
 0x274   : > { %v1190_v42 = vmax.f32 %v1158_v31, 0.0  ;;  %v1160_v36 = vadd.f32 %v1128_v33, %v1095_v32  ;;  %v1104_v33 = vmul.f32 %v2260_v5, %v2217_v30  ;;  %v1106_v30 = vmul.f32 %v2260_v5, %v2227_v55 }
 0x275   : > { %v1191_v39 = vmax.f32 %v1159_v61, 0.0  ;;  %v1161_v40 = vadd.f32 %v1129_v35, %v1096_v37 }
 0x276   : > { %v1192_v58 = vmax.f32 %v1160_v36, 0.0 }
 0x277   : > { %v1532_v41 = vpack.c.bf16 %v1191_v39, %v1190_v42  ;;  %v1193_v44 = vmax.f32 %v1161_v40, 0.0  ;;  %v1034_v45 = vpop.f32.mrb[4].mxu1 }
 0x278   : > { %v1130_v62 = vmul.f32 %v2262_v6, %v1034_v45  ;;  %v1036_v46 = vpop.f32.mrb[5].mxu1 }
 0x279   : > { %1314 = vst [vmem:[#allocation10 + $0x20] sm:$0xff] %v1532_v41  ;;  %v1533_v43 = vpack.c.bf16 %v1193_v44, %v1192_v58  ;;  %v1131_v48 = vmul.f32 %v2262_v6, %v1036_v46  ;;  %v1038_v49 = vpop.f32.mrb[6].mxu1  ;;  %v1107_v46 = vmul.f32 %v2260_v5, %v2225_v52  ;;  %v1109_v52 = vmul.f32 %v2260_v5, %v2235_v21 }
 0x27a   : > { %v1162_v50 = vadd.f32 %v1130_v62, %v1097_v38  ;;  %v1132_v15 = vmul.f32 %v2262_v6, %v1038_v49  ;;  %v1040_v2 = vpop.f32.mrb[7].mxu1 }
 0x27b   : > { %1315 = vst [vmem:[#allocation10 + $0x28] sm:$0xff] %v1533_v43  ;;  %v1163_v63 = vadd.f32 %v1131_v48, %v1098_v47  ;;  %v1133_v8 = vmul.f32 %v2262_v6, %v1040_v2  ;;  %v1108_v48 = vmul.f32 %v2260_v5, %v2229_v56  ;;  %v1110_v56 = vmul.f32 %v2260_v5, %v2239_v27 }
 0x27c   : > { %v1194_v9 = vmax.f32 %v1162_v50, 0.0  ;;  %v1164_v19 = vadd.f32 %v1132_v15, %v1099_v1 }
 0x27d   : > { %v1195_v3 = vmax.f32 %v1163_v63, 0.0  ;;  %v1165_v10 = vadd.f32 %v1133_v8, %v1100_v7 }
 0x27e   : > { %v1196_v11 = vmax.f32 %v1164_v19, 0.0 }
 0x27f   : > { %v1534_v12 = vpack.c.bf16 %v1195_v3, %v1194_v9  ;;  %v1197_v13 = vmax.f32 %v1165_v10, 0.0  ;;  %v1044_v14 = vpop.f32.mrb[8].mxu1 }
 0x280   : > { %v1134_v16 = vmul.f32 %v2262_v6, %v1044_v14  ;;  %v1046_v17 = vpop.f32.mrb[9].mxu1 }
 0x281   : > { %1316 = vst [vmem:[#allocation10 + $0x30] sm:$0xff] %v1534_v12  ;;  %v1535_v18 = vpack.c.bf16 %v1197_v13, %v1196_v11  ;;  %v1135_v23 = vmul.f32 %v2262_v6, %v1046_v17  ;;  %v1048_v20 = vpop.f32.mrb[10].mxu1  ;;  %v1111_v13 = vmul.f32 %v2260_v5, %v2237_v22  ;;  %v1113_v22 = vmul.f32 %v2260_v5, %v2247_v53 }
 0x282   : > { %v1166_v24 = vadd.f32 %v1134_v16, %v1101_v0  ;;  %v1136_v31 = vmul.f32 %v2262_v6, %v1048_v20  ;;  %v1050_v32 = vpop.f32.mrb[11].mxu1  ;;  %v1112_v16 = vmul.f32 %v2260_v5, %v2241_v28  ;;  %v1114_v28 = vmul.f32 %v2260_v5, %v2251_v59 }
 0x283   : > { %1317 = vst [vmem:[#allocation10 + $0x38] sm:$0xff] %v1535_v18  ;;  %v1167_v25 = vadd.f32 %v1135_v23, %v1102_v4  ;;  %v1137_v34 = vmul.f32 %v2262_v6, %v1050_v32 }
 0x284   : > { %v1198_v37 = vmax.f32 %v1166_v24, 0.0  ;;  %v1168_v61 = vadd.f32 %v1136_v31, %v1103_v57 }
 0x285   : > { %v1199_v29 = vmax.f32 %v1167_v25, 0.0  ;;  %v1169_v35 = vadd.f32 %v1137_v34, %v1104_v33 }
 0x286   : > { %v1200_v42 = vmax.f32 %v1168_v61, 0.0 }
 0x287   : > { %v1536_v36 = vpack.c.bf16 %v1199_v29, %v1198_v37  ;;  %v1201_v39 = vmax.f32 %v1169_v35, 0.0  ;;  %v1054_v40 = vpop.f32.mrb[12].mxu1  ;;  %v1115_v29 = vmul.f32 %v2260_v5, %v2249_v54 }
 0x288   : > { %v1138_v58 = vmul.f32 %v2262_v6, %v1054_v40  ;;  %v1056_v41 = vpop.f32.mrb[13].mxu1 }
 0x289   : > { %1318 = vst [vmem:[#allocation10 + $0x40] sm:$0xff] %v1536_v36  ;;  %v1537_v44 = vpack.c.bf16 %v1201_v39, %v1200_v42  ;;  %v1139_v45 = vmul.f32 %v2262_v6, %v1056_v41  ;;  %v1058_v38 = vpop.f32.mrb[14].mxu1  ;;  %v1116_v36 = vmul.f32 %v2260_v5, %v2253_v60 }
 0x28a   : > { %v1170_v62 = vadd.f32 %v1138_v58, %v1105_v26  ;;  %v1140_v43 = vmul.f32 %v2262_v6, %v1058_v38  ;;  %v1060_v47 = vpop.f32.mrb[15].mxu1 }
 0x28b   : > { %1319 = vst [vmem:[#allocation10 + $0x48] sm:$0xff] %v1537_v44  ;;  %v1171_v51 = vadd.f32 %v1139_v45, %v1106_v30  ;;  %v1141_v49 = vmul.f32 %v2262_v6, %v1060_v47 }
 0x28c   : > { %v1202_v50 = vmax.f32 %v1170_v62, 0.0  ;;  %v1172_v1 = vadd.f32 %v1140_v43, %v1107_v46 }
 0x28d   : > { %v1203_v55 = vmax.f32 %v1171_v51, 0.0  ;;  %v1173_v15 = vadd.f32 %v1141_v49, %v1108_v48 }
 0x28e   : > { %v1204_v2 = vmax.f32 %v1172_v1, 0.0 }
 0x28f   : > { %v1538_v63 = vpack.c.bf16 %v1203_v55, %v1202_v50  ;;  %v1205_v7 = vmax.f32 %v1173_v15, 0.0  ;;  %v1064_v8 = vpop.f32.mrb[16].mxu1 }
 0x290   : > { %v1142_v9 = vmul.f32 %v2262_v6, %v1064_v8  ;;  %v1066_v19 = vpop.f32.mrb[17].mxu1 }
 0x291   : > { %1320 = vst [vmem:[#allocation10 + $0x50] sm:$0xff] %v1538_v63  ;;  %v1539_v3 = vpack.c.bf16 %v1205_v7, %v1204_v2  ;;  %v1143_v10 = vmul.f32 %v2262_v6, %v1066_v19  ;;  %v1068_v11 = vpop.f32.mrb[18].mxu1 }
 0x292   : > { %v1174_v12 = vadd.f32 %v1142_v9, %v1109_v52  ;;  %v1144_v14 = vmul.f32 %v2262_v6, %v1068_v11  ;;  %v1070_v0 = vpop.f32.mrb[19].mxu1 }
 0x293   : > { %1321 = vst [vmem:[#allocation10 + $0x58] sm:$0xff] %v1539_v3  ;;  %v1175_v21 = vadd.f32 %v1143_v10, %v1110_v56  ;;  %v1145_v17 = vmul.f32 %v2262_v6, %v1070_v0 }
 0x294   : > { %v1206_v18 = vmax.f32 %v1174_v12, 0.0  ;;  %v1176_v4 = vadd.f32 %v1144_v14, %v1111_v13 }
 0x295   : > { %v1207_v27 = vmax.f32 %v1175_v21, 0.0  ;;  %v1177_v23 = vadd.f32 %v1145_v17, %v1112_v16 }
 0x296   : > { %v1208_v20 = vmax.f32 %v1176_v4, 0.0 }
 0x297   : > { %v1540_v24 = vpack.c.bf16 %v1207_v27, %v1206_v18  ;;  %v1209_v57 = vmax.f32 %v1177_v23, 0.0  ;;  %v1074_v31 = vpop.f32.mrb[20].mxu1 }
 0x298   : > { %v1146_v32 = vmul.f32 %v2262_v6, %v1074_v31  ;;  %v1076_v25 = vpop.f32.mrb[21].mxu1 }
 0x299   : > { %1322 = vst [vmem:[#allocation10 + $0x60] sm:$0xff] %v1540_v24  ;;  %v1541_v33 = vpack.c.bf16 %v1209_v57, %v1208_v20  ;;  %v1147_v34 = vmul.f32 %v2262_v6, %v1076_v25  ;;  %v1078_v37 = vpop.f32.mrb[22].mxu1 }
 0x29a   : > { %v1178_v61 = vadd.f32 %v1146_v32, %v1113_v22  ;;  %v1148_v35 = vmul.f32 %v2262_v6, %v1078_v37  ;;  %v1080_v42 = vpop.f32.mrb[23].mxu1 }
 0x29b   : > { %1323 = vst [vmem:[#allocation10 + $0x68] sm:$0xff] %v1541_v33  ;;  %v1179_v53 = vadd.f32 %v1147_v34, %v1114_v28  ;;  %v1149_v39 = vmul.f32 %v2262_v6, %v1080_v42 }
 0x29c   : > { %v1210_v40 = vmax.f32 %v1178_v61, 0.0  ;;  %v1180_v59 = vadd.f32 %v1148_v35, %v1115_v29 }
 0x29d   : > { %v1211_v26 = vmax.f32 %v1179_v53, 0.0  ;;  %v1181_v58 = vadd.f32 %v1149_v39, %v1116_v36 }
 0x29e   : > { %v1212_v41 = vmax.f32 %v1180_v59, 0.0 }
 0x29f   : > { %v1542_v54 = vpack.c.bf16 %v1211_v26, %v1210_v40  ;;  %v1213_v44 = vmax.f32 %v1181_v58, 0.0 }
 0x2a1   : > { %1324 = vst [vmem:[#allocation10 + $0x70] sm:$0xff] %v1542_v54  ;;  %v1543_v30 = vpack.c.bf16 %v1213_v44, %v1212_v41 }
 0x2a3   : > { %1325 = vst [vmem:[#allocation10 + $0x78] sm:$0xff] %v1543_v30 }
 0x2a4   : > { %1842 = shalt.err (!%p1839_p8)
}
 0x2a5   : > { %s1843_s17 = scalar_lea.hbm %s2400_s4, 2048 }
 0x2a6   : > { %p1844_p12 = scmp.ne.s32.totalorder %s2400_s4, %s1843_s17  ;;  %p1849_p9 = scmp.lt.u32.totalorder %s1843_s17, %s2400_s4 }
 0x2a8   : > { %p1845_p4 = pnand %p1844_p12, %p1606_p10 }
 0x2aa   : > { %p1846_p6 = pneg %p1845_p4 }
 0x2ac   : > { %p1851_p5 = pnand %p1849_p9, %p1846_p6 }
 0x2ae   : > { %1854 = shalt.err (!%p1851_p5)
}
 0x2af   : > { %s1917_s21 = smov 128   ;;  %s1918_s22 = smov 8  }
 0x2b0   : > { %1587 = dma.vmem_to_hbm [thread:$0]  (%p1606_p10), %s1333_s16, 2048, %s2400_s4, [#allocation6], %s1917_s21, %s1917_s21, %s1918_s22  }
 0x2b1   : > { %1886 = dma.done.wait (%p1606_p10), [#allocation6], 2048  }
 0x2b2   : > { %1888 = vsyncadd (%p1606_p10), [#allocation6], 4294965248 }
 0x2b3 PF: > { %p18_p7 = scmp.ge.s32.totalorder %s1978_s29, 4   ;;  %s2418_s25 = smov %s1895_s26 }
 0x2b4   : > { %s2419_s26 = smov %s1899_s27  ;;  %s2420_s27 = smov %s1988_s6 }
 0x2b5   : > { %s2421_s28 = smov %s1978_s29  ;;  %20 = sbr.rel (!%p18_p7) target bundleno = 16 (0x10), region = 80 }
 0x2bc   :  { %1348 = vsyncpa [#allocation5], 1 }
 0x2bd   :  { %1350 = vsyncpa [#allocation5 + $0x1], 1 }
 0x2be   :  { %1351 = vsyncpa [#allocation8], 1 }
 0x2bf   :  { %1352 = vsyncpa [#allocation6], 1 }
 0x2c0   :  { %1354 = vsyncpa [#allocation6 + $0x1], 1 }

// kernel: tpu_custom_call.1
= control target key start
LH: loop header
LB: loop body
LE: loop exit
PB: predicated region body
PF: predicated region fallthrough
CT: control target
= control target key end

     0   :  { %s2396_s0 = inlined_call_operand.hbm [shape: f32[2], index: 0, kind: input, shape index: {}]   ;;  %s2397_s1 = inlined_call_operand.hbm [shape: f32[128,256], index: 1, kind: input, shape index: {}]   ;;  %s2398_s2 = inlined_call_operand.hbm [shape: bf16[128,128], index: 2, kind: input, shape index: {}]   ;;  %s2399_s3 = inlined_call_operand.hbm [shape: bf16[512,256], index: 3, kind: input, shape index: {}]   ;;  %s2400_s4 = inlined_call_operand.hbm [shape: bf16[128,256], index: 4, kind: output, shape index: {}]  }
   0x1   :  { %s1733_s17 = scalar_lea.hbm %s2396_s0, 16 }
   0x2   :  { %p1734_p0 = scmp.ne.s32.totalorder %s2396_s0, %s1733_s17  ;;  %p1737_p1 = scmp.lt.u32.totalorder %s1733_s17, %s2396_s0 }
   0x4   :  { %p1739_p2 = pnand %p1737_p1, %p1734_p0 }
   0x6   :  { %1742 = shalt.err (!%p1739_p2)  }
   0x7   :  { %s1905_s22 = smov [#allocation3]  }
   0x8   :  { %10 = dma.hbm_to_smem %s2396_s0, 16, %s1905_s22, [#allocation2] }
   0x9   :  { %1871 = dma.done.wait [#allocation2], 16 }
   0xa   :  { %1872 = vsyncadd [#allocation2], 4294967280 }
   0xb   :  { %12 = sfence }
   0xc   :  { %13 = vsyncpa [#allocation5], 0 }
   0xd   :  { %14 = vsyncpa [#allocation8], 0 }
   0xe   :  { %15 = vsyncpa [#allocation6], 0  ;;  %s1956_s25 = smov 0   ;;  %s1958_s26 = smov 0  }
   0xf   :  { %s1960_s27 = smov 0   ;;  %s1962_s28 = smov 0  }
  0x10 LB: > { %s1975_s0 = sadd.s32 4294967295, %s1903_s28   ;;  %s1978_s29 = sadd.s32 1, %s1903_s28   ;;  %s1903_s28 = sphi %s1962_s28, %s2421_s28   ;;  %s1899_s27 = sphi %s1960_s27, %s2420_s27   ;;  %s1895_s26 = sphi %s1958_s26, %s2419_s26   ;;  %s1891_s25 = sphi %s1956_s25, %s2418_s25  }
  0x11   : > { %s67_s30 = ssub.s32 %s1903_s28, %s1978_s29  ;;  %s70_s5 = sadd.s32 1, %s1899_s27 }
  0x12   : > { %p68_p3 = scmp.eq.s32.totalorder %s67_s30, 0  ;;  %p77_p4 = scmp.ne.s32.totalorder %s1899_s27, %s1895_s26 }
  0x13   : > { %p78_p5 = scmp.eq.s32.totalorder %s1903_s28, 0  ;;  %p83_p6 = scmp.ne.s32.totalorder %s1895_s26, %s1891_s25 }
  0x14   : > { %s1988_s6 = scalar_select %p68_p3, %s1899_s27, %s70_s5  }
  0x15   : > { %p1990_p7 = por %p78_p5, %p77_p4  ;;  %p2401_p8 = scmp.eq.s32.totalorder %s1975_s0, 0 }
  0x16   : > { %p1405_p9 = scmp.ge.s32.totalorder %s1903_s28, 1  ;;  %p115_p10 = scmp.lt.s32.totalorder %s1903_s28, 3 }
  0x17   : > { %p1999_p11 = por %p2401_p8, %p83_p6  ;;  %s1906_s10 = smov [#allocation4]  }
  0x18   : > { %p2004_p13 = pnand %p1405_p9, %p115_p10  ;;  %s127_s11 = sshll.u32 %s1906_s10, 4  ;;  %s128_s11 = int_to_ptr.vmem [resolvable:$true] %s127_s11 }
  0x19   : > { %s2406_s8 = scalar_select %p1999_p11, 1, 0 }
  0x1a   : > { %s2407_s9 = scalar_select %p2004_p13, 1, 0 }
  0x1b   : > { %p1590_p0 = pneg %p2004_p13  ;;  %p1603_p2 = scmp.lt.s32.totalorder %s1903_s28, 2 }
  0x1c   : > { %s1743_s16 = scalar_lea.hbm %s2397_s1, 4096 }
  0x1d   : > { %p2012_p1 = pnand %p1590_p0, %p2401_p8  ;;  %p2019_p3 = pnand %p1603_p2, %p1990_p7 }
  0x1e   : > { %p1744_p4 = scmp.ne.s32.totalorder %s2397_s1, %s1743_s16  ;;  %p1750_p7 = scmp.lt.u32.totalorder %s1743_s16, %s2397_s1 }
  0x1f   : > { %s2409_s13 = scalar_select %p2019_p3, 1, 0 }
  0x20   : > { %p1745_p5 = pneg %p2012_p1 }
  0x22   : > { %p1746_p6 = pnand %p1745_p5, %p1744_p4 }
  0x24   : > { %p1747_p9 = pneg %p1746_p6 }
  0x26   : > { %p1752_p10 = pnand %p1750_p7, %p1747_p9 }
  0x28   : > { %1755 = shalt.err (!%p1752_p10)
}
  0x29   : > { %s1756_s21 = scalar_lea.vmem %s128_s11, 4096  ;;  %p1764_p8 = scmp.lt.s32.totalorder %s128_s11, %s128_s11 }
  0x2a   : > { %p1757_p0 = scmp.ne.s32.totalorder %s128_s11, %s1756_s21  ;;  %p1765_p11 = scmp.lt.s32.totalorder %s1756_s21, %s1756_s21 }
  0x2c   : > { %p1759_p2 = pnand %p1757_p0, %p1745_p5  ;;  %p1766_p13 = por %p1765_p11, %p1764_p8 }
  0x2e   : > { %p1760_p12 = pneg %p1759_p2 }
  0x30   : > { %p1767_p3 = pnand %p1766_p13, %p1760_p12 }
  0x32   : > { %1770 = shalt.err (!%p1767_p3)
}
  0x33   : > { %s1907_s22 = smov 256   ;;  %s1908_s23 = smov 16  }
  0x34   : > { %1593 = dma.hbm_to_vmem [thread:$0]  (!%p2012_p1), %s2397_s1, 4096, %s128_s11, [#allocation5], %s1907_s22, %s1907_s22, %s1908_s23  }
  0x35   : > { %s1909_s30 = smov [#allocation7]   ;;  %s1771_s14 = scalar_lea.hbm %s2398_s2, 1024 }
  0x36   : > { %s140_s5 = sshll.u32 %s1909_s30, 4  ;;  %p1772_p8 = scmp.ne.s32.totalorder %s2398_s2, %s1771_s14  ;;  %s141_s5 = int_to_ptr.vmem [resolvable:$true] %s140_s5 }
  0x37   : > { %p1778_p13 = scmp.lt.u32.totalorder %s1771_s14, %s2398_s2 }
  0x38   : > { %p1774_p11 = pnand %p1772_p8, %p1745_p5 }
  0x3a   : > { %p1775_p12 = pneg %p1774_p11 }
  0x3c   : > { %p1780_p3 = pnand %p1778_p13, %p1775_p12 }
  0x3e   : > { %1783 = shalt.err (!%p1780_p3)
}
  0x3f   : > { %s1784_s11 = scalar_lea.vmem %s141_s5, 1024  ;;  %p1792_p7 = scmp.lt.s32.totalorder %s141_s5, %s141_s5 }
  0x40   : > { %p1785_p4 = scmp.ne.s32.totalorder %s141_s5, %s1784_s11  ;;  %p1793_p10 = scmp.lt.s32.totalorder %s1784_s11, %s1784_s11 }
  0x42   : > { %p1787_p6 = pnand %p1785_p4, %p1745_p5  ;;  %p1794_p0 = por %p1793_p10, %p1792_p7 }
  0x44   : > { %p1788_p9 = pneg %p1787_p6 }
  0x46   : > { %p1795_p2 = pnand %p1794_p0, %p1788_p9 }
  0x48   : > { %1798 = shalt.err (!%p1795_p2)
}
  0x49   : > { %s1910_s19 = smov 64   ;;  %s1911_s20 = smov 4  }
  0x4a   : > { %1596 = dma.hbm_to_vmem [thread:$0]  (!%p2012_p1), %s2398_s2, 1024, %s141_s5, [#allocation8], %s1910_s19, %s1910_s19, %s1911_s20  }
  0x4b   : > { %s154_s23 = sand.u32 1, %s1903_s28   ;;  %s156_s24 = sand.u32 1, %s1899_s27  }
  0x4c   : > { %s1409_s25 = sshll.u32 %s156_s24, 8  ;;  %s1511_s30 = sshll.u32 %s1903_s28, 12 }
  0x4d   : > { %s2071_s14 = scalar_lea.hbm %s2399_s3, %s1511_s30  ;;  %s158_s15 = scalar_lea.vmem [#allocation9], %s1409_s25 }
  0x4e   : > { %s166_s16 = sshll.u32 %s158_s15, 4  ;;  %s2075_s12 = scalar_lea.sflag [#allocation5], %s154_s23  ;;  %s2073_s16 = int_to_ptr.vmem [resolvable:$true] %s166_s16 }
  0x4f   : > { %s1799_s5 = scalar_lea.hbm %s2071_s14, 4096  ;;  %p2410_p5 = scmp.ne.s32.totalorder %s2409_s13, 0 }
  0x50   : > { %p1800_p1 = scmp.ne.s32.totalorder %s2071_s14, %s1799_s5  ;;  %s1804_s18 = scalar_lea.hbm %s2399_s3, 8192 }
  0x51   : > { %p1801_p8 = pneg %p2410_p5  ;;  %p1805_p13 = scmp.lt.u32.totalorder %s2071_s14, %s2399_s3 }
  0x52   : > { %p1806_p3 = scmp.lt.u32.totalorder %s1804_s18, %s1799_s5  ;;  %p1808_p6 = scmp.lt.u32.totalorder %s1799_s5, %s2071_s14 }
  0x53   : > { %p1802_p11 = pnand %p1801_p8, %p1800_p1 }
  0x54   : > { %p1807_p4 = por %p1806_p3, %p1805_p13 }
  0x55   : > { %p1803_p12 = pneg %p1802_p11 }
  0x56   : > { %p1809_p9 = por %p1808_p6, %p1807_p4 }
  0x58   : > { %p1810_p7 = pnand %p1809_p9, %p1803_p12 }
  0x5a   : > { %1813 = shalt.err (!%p1810_p7)
}
  0x5b   : > { %s1814_s20 = scalar_lea.vmem %s2073_s16, 4096  ;;  %s1912_s21 = smov [#allocation9]  }
  0x5c   : > { %p1815_p10 = scmp.ne.s32.totalorder %s2073_s16, %s1814_s20  ;;  %s1819_s22 = sshll.u32 %s1912_s21, 4  ;;  %s1820_s22 = int_to_ptr.vmem [resolvable:$false] %s1819_s22 }
  0x5d   : > { %s1821_s23 = scalar_lea.vmem %s1820_s22, 8192  ;;  %p1822_p1 = scmp.lt.s32.totalorder %s2073_s16, %s1820_s22 }
  0x5e   : > { %p1817_p0 = pnand %p1815_p10, %p1801_p8  ;;  %p1823_p11 = scmp.lt.s32.totalorder %s1821_s23, %s1814_s20 }
  0x60   : > { %p1818_p2 = pneg %p1817_p0  ;;  %p1824_p13 = por %p1823_p11, %p1822_p1 }
  0x62   : > { %p1825_p3 = pnand %p1824_p13, %p1818_p2 }
  0x64   : > { %1828 = shalt.err (!%p1825_p3)
}
  0x65   : > { %s1913_s24 = smov 128   ;;  %s1914_s25 = smov 8  }
  0x66   : > { %1600 = dma.hbm_to_vmem [thread:$0]  (!%p2410_p5), %s2071_s14, 4096, %s2073_s16, %s2075_s12, %s1913_s24, %s1913_s24, %s1914_s25  }
  0x67   : > { %p2411_p8 = scmp.ne.s32.totalorder %s2407_s9, 0 }
  0x68   : > { %p2412_p12 = scmp.eq.s32.totalorder (!%p2411_p8), %s1975_s0, 0 }
  0x69   : > { %178 = sbr.rel (%p2411_p8) target bundleno = 691 (0x2b3), region = 32 }
  0x70   : > { %1874 = dma.done.wait (%p2412_p12), [#allocation5], 4096   ;;  %p2413_p4 = pmov %p2412_p12 }
  0x72   : > { %1876 = vsyncadd (%p2413_p4), [#allocation5], 4294963200  ;;  %p2414_p6 = pmov %p2413_p4 }
  0x73   : > { %p2415_p9 = pmov %p2413_p4 }
  0x74   : > { %1878 = dma.done.wait (%p2414_p6), [#allocation8], 1024  }
  0x75   : > { %1880 = vsyncadd (%p2415_p9), [#allocation8], 4294966272  ;;  %s188_s13 = sand.u32 1, %s1975_s0   ;;  %s190_s30 = sand.u32 1, %s1895_s26  }
  0x76   : > { %s1416_s7 = sshll.u32 %s190_s30, 8  ;;  %s189_s9 = scalar_lea.sflag [#allocation5], %s188_s13 }
  0x77   : > { %s2115_s10 = scalar_lea.vmem [#allocation9], %s1416_s7  ;;  %p2416_p5 = scmp.ne.s32.totalorder %s2406_s8, 0 }
  0x79   : > { %1882 = dma.done.wait (%p2416_p5), %s189_s9, 4096  }
  0x7a   : > { %1884 = vsyncadd (%p2416_p5), %s189_s9, 4294963200  ;;  %p2417_p7 = scmp.ne.s32.totalorder %s1975_s0, 0 }
  0x7b   : > { %v216_v0 = vld [vmem:[#allocation4] sm:$0xff] (!%p2417_p7)  ;;  %v217_v1 = vld [vmem:[#allocation4 + $0x8] sm:$0xff] (!%p2417_p7)  ;;  %v218_v2 = vld [vmem:[#allocation4 + $0x10] sm:$0xff] (!%p2417_p7) }
  0x7c   : > { %215 = sbr.rel (%p2417_p7) target bundleno = 138 (0x8a), region = 48  ;;  %v1512_v3 = vpack.c.bf16 (!%p2417_p7), %v217_v1, %v216_v0  ;;  %v219_v4 = vld [vmem:[#allocation4 + $0x18] sm:$0xff] (!%p2417_p7)  ;;  %v220_v5 = vld [vmem:[#allocation4 + $0x20] sm:$0xff] (!%p2417_p7)  ;;  %v221_v6 = vld [vmem:[#allocation4 + $0x28] sm:$0xff] (!%p2417_p7) }
  0x7d   : > { %v1513_v7 = vpack.c.bf16 (!%p2417_p7), %v219_v4, %v218_v2  ;;  %v1514_v8 = vpack.c.bf16 (!%p2417_p7), %v221_v6, %v220_v5  ;;  %v222_v9 = vld [vmem:[#allocation4 + $0x30] sm:$0xff] (!%p2417_p7)  ;;  %v223_v10 = vld [vmem:[#allocation4 + $0x38] sm:$0xff] (!%p2417_p7)  ;;  %v224_v11 = vld [vmem:[#allocation4 + $0x40] sm:$0xff] (!%p2417_p7) }
  0x7e   : > { %344 = vst [vmem:[#allocation10] sm:$0xff] (!%p2417_p7), %v1512_v3  ;;  %v1515_v12 = vpack.c.bf16 (!%p2417_p7), %v223_v10, %v222_v9  ;;  %v225_v13 = vld [vmem:[#allocation4 + $0x48] sm:$0xff] (!%p2417_p7)  ;;  %v226_v14 = vld [vmem:[#allocation4 + $0x50] sm:$0xff] (!%p2417_p7)  ;;  %v227_v15 = vld [vmem:[#allocation4 + $0x58] sm:$0xff] (!%p2417_p7) }
  0x7f   : > { %345 = vst [vmem:[#allocation10 + $0x8] sm:$0xff] (!%p2417_p7), %v1513_v7  ;;  %346 = vst [vmem:[#allocation10 + $0x10] sm:$0xff] (!%p2417_p7), %v1514_v8  ;;  %v1516_v16 = vpack.c.bf16 (!%p2417_p7), %v225_v13, %v224_v11  ;;  %v1517_v17 = vpack.c.bf16 (!%p2417_p7), %v227_v15, %v226_v14  ;;  %v228_v18 = vld [vmem:[#allocation4 + $0x60] sm:$0xff] (!%p2417_p7)  ;;  %v229_v19 = vld [vmem:[#allocation4 + $0x68] sm:$0xff] (!%p2417_p7) }
  0x80   : > { %v230_v20 = vld [vmem:[#allocation4 + $0x70] sm:$0xff] (!%p2417_p7)  ;;  %347 = vst [vmem:[#allocation10 + $0x18] sm:$0xff] (!%p2417_p7), %v1515_v12  ;;  %v1518_v21 = vpack.c.bf16 (!%p2417_p7), %v229_v19, %v228_v18  ;;  %v231_v22 = vld [vmem:[#allocation4 + $0x78] sm:$0xff] (!%p2417_p7)  ;;  %v232_v23 = vld [vmem:[#allocation4 + $0x80] sm:$0xff] (!%p2417_p7) }
  0x81   : > { %v233_v24 = vld [vmem:[#allocation4 + $0x88] sm:$0xff] (!%p2417_p7)  ;;  %348 = vst [vmem:[#allocation10 + $0x20] sm:$0xff] (!%p2417_p7), %v1516_v16  ;;  %349 = vst [vmem:[#allocation10 + $0x28] sm:$0xff] (!%p2417_p7), %v1517_v17  ;;  %v1519_v25 = vpack.c.bf16 (!%p2417_p7), %v231_v22, %v230_v20  ;;  %v234_v27 = vld [vmem:[#allocation4 + $0x90] sm:$0xff] (!%p2417_p7) }
  0x82   : > { %v1520_v26 = vpack.c.bf16 (!%p2417_p7), %v233_v24, %v232_v23  ;;  %v235_v28 = vld [vmem:[#allocation4 + $0x98] sm:$0xff] (!%p2417_p7)  ;;  %v236_v29 = vld [vmem:[#allocation4 + $0xa0] sm:$0xff] (!%p2417_p7)  ;;  %350 = vst [vmem:[#allocation10 + $0x30] sm:$0xff] (!%p2417_p7), %v1518_v21  ;;  %v237_v31 = vld [vmem:[#allocation4 + $0xa8] sm:$0xff] (!%p2417_p7) }
  0x83   : > { %v1521_v30 = vpack.c.bf16 %v235_v28, %v234_v27  ;;  %v238_v32 = vld [vmem:[#allocation4 + $0xb0] sm:$0xff]  ;;  %v239_v33 = vld [vmem:[#allocation4 + $0xb8] sm:$0xff]  ;;  %351 = vst [vmem:[#allocation10 + $0x38] sm:$0xff] %v1519_v25  ;;  %v1522_v34 = vpack.c.bf16 %v237_v31, %v236_v29  ;;  %v240_v36 = vld [vmem:[#allocation4 + $0xc0] sm:$0xff] }
  0x84   : > { %352 = vst [vmem:[#allocation10 + $0x40] sm:$0xff] %v1520_v26  ;;  %v1523_v35 = vpack.c.bf16 %v239_v33, %v238_v32  ;;  %v241_v37 = vld [vmem:[#allocation4 + $0xc8] sm:$0xff]  ;;  %v242_v38 = vld [vmem:[#allocation4 + $0xd0] sm:$0xff]  ;;  %v243_v40 = vld [vmem:[#allocation4 + $0xd8] sm:$0xff] }
  0x85   : > { %353 = vst [vmem:[#allocation10 + $0x48] sm:$0xff] %v1521_v30  ;;  %v1524_v39 = vpack.c.bf16 %v241_v37, %v240_v36  ;;  %v244_v41 = vld [vmem:[#allocation4 + $0xe0] sm:$0xff]  ;;  %v245_v42 = vld [vmem:[#allocation4 + $0xe8] sm:$0xff]  ;;  %354 = vst [vmem:[#allocation10 + $0x50] sm:$0xff] %v1522_v34  ;;  %v1525_v43 = vpack.c.bf16 %v243_v40, %v242_v38 }
  0x86   : > { %355 = vst [vmem:[#allocation10 + $0x58] sm:$0xff] %v1523_v35  ;;  %v1526_v44 = vpack.c.bf16 %v245_v42, %v244_v41  ;;  %v246_v45 = vld [vmem:[#allocation4 + $0xf0] sm:$0xff]  ;;  %v247_v46 = vld [vmem:[#allocation4 + $0xf8] sm:$0xff] }
  0x87   : > { %356 = vst [vmem:[#allocation10 + $0x60] sm:$0xff] %v1524_v39  ;;  %v1527_v47 = vpack.c.bf16 %v247_v46, %v246_v45  ;;  %357 = vst [vmem:[#allocation10 + $0x68] sm:$0xff] %v1525_v43 }
  0x88   : > { %358 = vst [vmem:[#allocation10 + $0x70] sm:$0xff] %v1526_v44 }
  0x89   : > { %359 = vst [vmem:[#allocation10 + $0x78] sm:$0xff] %v1527_v47 }
  0x8a PF: > { %v1915_v50 = vmov 0   ;;  %v1687_v62 = vld [vmem:[%s2115_s10 + $0x4] ss:$8 sps:$4 sm:$0xff]   ;;  %v1685_v63 = vld [vmem:[%s2115_s10] ss:$8 sps:$4 sm:$0xff]   ;;  %v1679_v18 = vld [vmem:[#allocation7 + $0x10] sm:$0xff]  }
  0x8b   : > { %553 = vmatprep.mubr.bf16.mxu0 %v1915_v50  ;;  %v1690_v0 = vld [vmem:[%s2115_s10 + $0x14] ss:$8 sps:$4 sm:$0xff]   ;;  %1544 = vmatprep.subr.bf16.mxu1 %v1687_v62  ;;  %v1688_v3 = vld [vmem:[%s2115_s10 + $0x10] ss:$8 sps:$4 sm:$0xff]   ;;  %v1693_v4 = vld [vmem:[%s2115_s10 + $0x24] ss:$8 sps:$4 sm:$0xff]  }
  0x8c   : > { %v1665_v57 = vld [vmem:[#allocation10 + $0x44] ss:$8 sps:$4 sm:$0xff]   ;;  %v1667_v58 = vld [vmem:[#allocation10 + $0x40] ss:$8 sps:$4 sm:$0xff]   ;;  %1560 = vmatpush1.bf16.msra.mxu1 %v1685_v63  ;;  %v1696_v7 = vld [vmem:[%s2115_s10 + $0x34] ss:$8 sps:$4 sm:$0xff]  }
  0x8d   : > { %v1653_v48 = vld [vmem:[#allocation10 + $0x4] ss:$8 sps:$4 sm:$0xff]   ;;  %v1655_v49 = vld [vmem:[#allocation10] ss:$8 sps:$4 sm:$0xff]   ;;  %v1668_v59 = vld [vmem:[#allocation10 + $0x54] ss:$8 sps:$4 sm:$0xff]   ;;  %1545 = vmatprep.subr.bf16.mxu1 %v1690_v0 }
  0x8e   : > { %521 = vmatprep.subr.bf16.mxu0 %v1653_v48  ;;  %v1656_v51 = vld [vmem:[#allocation10 + $0x14] ss:$8 sps:$4 sm:$0xff]   ;;  %v1658_v52 = vld [vmem:[#allocation10 + $0x10] ss:$8 sps:$4 sm:$0xff]   ;;  %v1671_v61 = vld [vmem:[#allocation10 + $0x64] ss:$8 sps:$4 sm:$0xff]  }
  0x8f   : > { %522 = vmatpush1.bf16.msra.mxu0 %v1655_v49  ;;  %v1659_v53 = vld [vmem:[#allocation10 + $0x24] ss:$8 sps:$4 sm:$0xff]   ;;  %v1661_v54 = vld [vmem:[#allocation10 + $0x20] ss:$8 sps:$4 sm:$0xff]   ;;  %v1670_v60 = vld [vmem:[#allocation10 + $0x50] ss:$8 sps:$4 sm:$0xff]  }
  0x90   : > { %523 = vmatprep.subr.bf16.mxu0 %v1656_v51  ;;  %v1673_v1 = vld [vmem:[#allocation10 + $0x60] ss:$8 sps:$4 sm:$0xff]   ;;  %v1674_v2 = vld [vmem:[#allocation10 + $0x74] ss:$8 sps:$4 sm:$0xff]   ;;  %1561 = vmatpush1.bf16.msra.mxu1 %v1688_v3  ;;  %v1676_v5 = vld [vmem:[#allocation10 + $0x70] ss:$8 sps:$4 sm:$0xff]  }
  0x91   : > { %v1662_v55 = vld [vmem:[#allocation10 + $0x34] ss:$8 sps:$4 sm:$0xff]   ;;  %v1664_v56 = vld [vmem:[#allocation10 + $0x30] ss:$8 sps:$4 sm:$0xff]   ;;  %1546 = vmatprep.subr.bf16.mxu1 %v1693_v4  ;;  %v1691_v6 = vld [vmem:[%s2115_s10 + $0x20] ss:$8 sps:$4 sm:$0xff]  }
  0x92   : > { %v1677_v8 = vld [vmem:[#allocation7] sm:$0xff]   ;;  %v1694_v9 = vld [vmem:[%s2115_s10 + $0x30] ss:$8 sps:$4 sm:$0xff]   ;;  %v1702_v12 = vld [vmem:[%s2115_s10 + $0x54] ss:$8 sps:$4 sm:$0xff]   ;;  %s360_s8 = sld [smem:[#allocation3 + %s1975_s0]] }
  0x93   : > { %524 = vmatpush1.bf16.msra.mxu0 %v1658_v52  ;;  %v1699_v10 = vld [vmem:[%s2115_s10 + $0x44] ss:$8 sps:$4 sm:$0xff]   ;;  %v1697_v11 = vld [vmem:[%s2115_s10 + $0x40] ss:$8 sps:$4 sm:$0xff]   ;;  %v1700_v14 = vld [vmem:[%s2115_s10 + $0x50] ss:$8 sps:$4 sm:$0xff]  }
  0x94   : > { %525 = vmatprep.subr.bf16.mxu0 %v1659_v53  ;;  %1562 = vmatpush1.bf16.msra.mxu1 %v1691_v6  ;;  %v1678_v13 = vld [vmem:[#allocation7 + $0x8] sm:$0xff]   ;;  %v1708_v17 = vld [vmem:[%s2115_s10 + $0x74] ss:$8 sps:$4 sm:$0xff]   ;;  %v1706_v19 = vld [vmem:[%s2115_s10 + $0x70] ss:$8 sps:$4 sm:$0xff]   ;;  %s1916_s15 = smov [#allocation10]  }
  0x95   : > { %1547 = vmatprep.subr.bf16.mxu1 %v1696_v7  ;;  %v1705_v15 = vld [vmem:[%s2115_s10 + $0x64] ss:$8 sps:$4 sm:$0xff]   ;;  %v1703_v16 = vld [vmem:[%s2115_s10 + $0x60] ss:$8 sps:$4 sm:$0xff]   ;;  %v1714_v22 = vld [vmem:[%s2115_s10 + $0x94] ss:$8 sps:$4 sm:$0xff]  }
  0x96   : > { %v1711_v20 = vld [vmem:[%s2115_s10 + $0x84] ss:$8 sps:$4 sm:$0xff]   ;;  %v1709_v21 = vld [vmem:[%s2115_s10 + $0x80] ss:$8 sps:$4 sm:$0xff]   ;;  %v1680_v23 = vld [vmem:[#allocation7 + $0x18] sm:$0xff]   ;;  %s1332_s16 = sshll.u32 %s1916_s15, 4  ;;  %s1333_s16 = int_to_ptr.vmem [resolvable:$true] %s1332_s16 }
  0x97   : > { %526 = vmatpush1.bf16.msra.mxu0 %v1661_v54  ;;  %v1712_v24 = vld [vmem:[%s2115_s10 + $0x90] ss:$8 sps:$4 sm:$0xff]   ;;  %v1717_v25 = vld [vmem:[%s2115_s10 + $0xa4] ss:$8 sps:$4 sm:$0xff]   ;;  %v1715_v26 = vld [vmem:[%s2115_s10 + $0xa0] ss:$8 sps:$4 sm:$0xff]   ;;  %p1836_p11 = scmp.lt.s32.totalorder %s1333_s16, %s1333_s16 }
  0x98   : > { %527 = vmatprep.subr.bf16.mxu0 %v1662_v55  ;;  %1563 = vmatpush1.bf16.msra.mxu1 %v1694_v9  ;;  %v1720_v27 = vld [vmem:[%s2115_s10 + $0xb4] ss:$8 sps:$4 sm:$0xff]   ;;  %v1681_v28 = vld [vmem:[#allocation7 + $0x20] sm:$0xff]   ;;  %v1718_v29 = vld [vmem:[%s2115_s10 + $0xb0] ss:$8 sps:$4 sm:$0xff]   ;;  %s1083_s14 = ssub.f32 1.0, %s360_s8 }
  0x99   : > { %1548 = vmatprep.subr.bf16.mxu1 %v1699_v10  ;;  %v1723_v30 = vld [vmem:[%s2115_s10 + $0xc4] ss:$8 sps:$4 sm:$0xff]   ;;  %v1721_v31 = vld [vmem:[%s2115_s10 + $0xc0] ss:$8 sps:$4 sm:$0xff]   ;;  %v1726_v32 = vld [vmem:[%s2115_s10 + $0xd4] ss:$8 sps:$4 sm:$0xff]  }
  0x9a   : > { %v1682_v33 = vld [vmem:[#allocation7 + $0x28] sm:$0xff]   ;;  %v1724_v34 = vld [vmem:[%s2115_s10 + $0xd0] ss:$8 sps:$4 sm:$0xff]   ;;  %v1732_v39 = vld [vmem:[%s2115_s10 + $0xf4] ss:$8 sps:$4 sm:$0xff]   ;;  %p1606_p10 = scmp.eq.s32.totalorder %s1975_s0, 1 }
  0x9b   : > { %528 = vmatpush1.bf16.msra.mxu0 %v1664_v56  ;;  %v1683_v35 = vld [vmem:[#allocation7 + $0x30] sm:$0xff]   ;;  %v1684_v36 = vld [vmem:[#allocation7 + $0x38] sm:$0xff]   ;;  %v1729_v37 = vld [vmem:[%s2115_s10 + $0xe4] ss:$8 sps:$4 sm:$0xff]   ;;  %s1829_s12 = scalar_lea.vmem %s1333_s16, 2048 }
  0x9c   : > { %529 = vmatprep.subr.bf16.mxu0 %v1665_v57  ;;  %1564 = vmatpush1.bf16.msra.mxu1 %v1697_v11  ;;  %v1727_v38 = vld [vmem:[%s2115_s10 + $0xe0] ss:$8 sps:$4 sm:$0xff]   ;;  %v1730_v40 = vld [vmem:[%s2115_s10 + $0xf0] ss:$8 sps:$4 sm:$0xff]   ;;  %p1830_p0 = scmp.ne.s32.totalorder %s1333_s16, %s1829_s12  ;;  %p1837_p13 = scmp.lt.s32.totalorder %s1829_s12, %s1829_s12 }
  0x9d   : > { %1549 = vmatprep.subr.bf16.mxu1 %v1702_v12  ;;  %v666_v41 = vld [vmem:[#allocation4] sm:$0xff]  ;;  %v667_v42 = vld [vmem:[#allocation4 + $0x8] sm:$0xff]  ;;  %v668_v43 = vld [vmem:[#allocation4 + $0x10] sm:$0xff] }
  0x9e   : > { %v669_v44 = vld [vmem:[#allocation4 + $0x18] sm:$0xff]  ;;  %v698_v46 = vmul.f32 0.1, %v666_v41  ;;  %v699_v47 = vmul.f32 0.1, %v667_v42  ;;  %v680_v41 = vld [vmem:[#allocation4 + $0x70] sm:$0xff]  ;;  %p1831_p2 = pnand %p1830_p0, %p1606_p10  ;;  %p1838_p3 = por %p1837_p13, %p1836_p11 }
  0x9f   : > { %530 = vmatpush1.bf16.msra.mxu0 %v1667_v58  ;;  %v701_v53 = vmul.f32 0.1, %v669_v44  ;;  %v681_v44 = vld [vmem:[#allocation4 + $0x78] sm:$0xff] }
  0xa0   : > { %531 = vmatprep.subr.bf16.mxu0 %v1668_v59  ;;  %1565 = vmatpush1.bf16.msra.mxu1 %v1700_v14  ;;  %v670_v59 = vld [vmem:[#allocation4 + $0x20] sm:$0xff]  ;;  %p1832_p1 = pneg %p1831_p2 }
  0xa1   : > { %1550 = vmatprep.subr.bf16.mxu1 %v1705_v15 }
  0xa2   : > { %p1839_p8 = pnand %p1838_p3, %p1832_p1 }
  0xa3   : > { %532 = vmatpush1.bf16.msra.mxu0 %v1670_v60  ;;  %v671_v60 = vld [vmem:[#allocation4 + $0x28] sm:$0xff] }
  0xa4   : > { %533 = vmatprep.subr.bf16.mxu0 %v1671_v61  ;;  %1566 = vmatpush1.bf16.msra.mxu1 %v1703_v16 }
  0xa5   : > { %1551 = vmatprep.subr.bf16.mxu1 %v1708_v17 }
  0xa7   : > { %534 = vmatpush1.bf16.msra.mxu0 %v1673_v1  ;;  %v673_v1 = vld [vmem:[#allocation4 + $0x38] sm:$0xff] }
  0xa8   : > { %535 = vmatprep.subr.bf16.mxu0 %v1674_v2  ;;  %1567 = vmatpush1.bf16.msra.mxu1 %v1706_v19 }
  0xa9   : > { %1552 = vmatprep.subr.bf16.mxu1 %v1711_v20 }
  0xab   : > { %536 = vmatpush1.bf16.msra.mxu0 %v1676_v5 }
  0xac   : > { %970 = vmatprep.subr.bf16.mxu0 %v1687_v62  ;;  %1568 = vmatpush1.bf16.msra.mxu1 %v1709_v21 }
  0xad   : > { %1553 = vmatprep.subr.bf16.mxu1 %v1714_v22 }
  0xae   : > { %554 = vmatmul.mubr.bf16.vlgmr.msra.gmra.mrb[0].mxu0 %v1677_v8 }
  0xaf   : > { %563 = vmatprep.mubr.bf16.mxu0 %v1915_v50  ;;  %971 = vmatpush1.bf16.msra.mxu0 %v1685_v63  ;;  %v672_v63 = vld [vmem:[#allocation4 + $0x30] sm:$0xff] }
  0xb0   : > { %972 = vmatprep.subr.bf16.mxu0 %v1690_v0  ;;  %1569 = vmatpush1.bf16.msra.mxu1 %v1712_v24  ;;  %v704_v8 = vmul.f32 0.1, %v672_v63 }
  0xb1   : > { %1554 = vmatprep.subr.bf16.mxu1 %v1717_v25 }
  0xb3   : > { %973 = vmatpush1.bf16.msra.mxu0 %v1688_v3  ;;  %v702_v3 = vmul.f32 0.1, %v670_v59 }
  0xb4   : > { %974 = vmatprep.subr.bf16.mxu0 %v1693_v4  ;;  %1570 = vmatpush1.bf16.msra.mxu1 %v1715_v26  ;;  %v703_v4 = vmul.f32 0.1, %v671_v60 }
  0xb5   : > { %1555 = vmatprep.subr.bf16.mxu1 %v1720_v27 }
  0xb6   : > { %564 = vmatmul.mubr.bf16.gmra.mrb[4].mxu0 %v1678_v13 }
  0xb7   : > { %573 = vmatprep.mubr.bf16.mxu0 %v1915_v50  ;;  %975 = vmatpush1.bf16.msra.mxu0 %v1691_v6 }
  0xb8   : > { %976 = vmatprep.subr.bf16.mxu0 %v1696_v7  ;;  %1571 = vmatpush1.bf16.msra.mxu1 %v1718_v29 }
  0xb9   : > { %1556 = vmatprep.subr.bf16.mxu1 %v1723_v30 }
  0xbb   : > { %977 = vmatpush1.bf16.msra.mxu0 %v1694_v9 }
  0xbc   : > { %978 = vmatprep.subr.bf16.mxu0 %v1699_v10  ;;  %1572 = vmatpush1.bf16.msra.mxu1 %v1721_v31 }
  0xbd   : > { %1557 = vmatprep.subr.bf16.mxu1 %v1726_v32 }
  0xbe   : > { %574 = vmatmul.mubr.bf16.gmra.mrb[8].mxu0 %v1679_v18  ;;  %v675_v18 = vld [vmem:[#allocation4 + $0x48] sm:$0xff] }
  0xbf   : > { %583 = vmatprep.mubr.bf16.mxu0 %v1915_v50  ;;  %979 = vmatpush1.bf16.msra.mxu0 %v1697_v11  ;;  %v705_v11 = vmul.f32 0.1, %v673_v1  ;;  %v682_v1 = vld [vmem:[#allocation4 + $0x80] sm:$0xff] }
  0xc0   : > { %980 = vmatprep.subr.bf16.mxu0 %v1702_v12  ;;  %1573 = vmatpush1.bf16.msra.mxu1 %v1724_v34 }
  0xc1   : > { %1558 = vmatprep.subr.bf16.mxu1 %v1729_v37 }
  0xc3   : > { %981 = vmatpush1.bf16.msra.mxu0 %v1700_v14 }
  0xc4   : > { %982 = vmatprep.subr.bf16.mxu0 %v1705_v15  ;;  %1574 = vmatpush1.bf16.msra.mxu1 %v1727_v38 }
  0xc5   : > { %1559 = vmatprep.subr.bf16.mxu1 %v1732_v39 }
  0xc6   : > { %584 = vmatmul.mubr.bf16.gmra.mrb[12].mxu0 %v1680_v23  ;;  %v677_v23 = vld [vmem:[#allocation4 + $0x58] sm:$0xff] }
  0xc7   : > { %593 = vmatprep.mubr.bf16.mxu0 %v1915_v50  ;;  %983 = vmatpush1.bf16.msra.mxu0 %v1703_v16 }
  0xc8   : > { %984 = vmatprep.subr.bf16.mxu0 %v1708_v17  ;;  %1575 = vmatpush1.bf16.msra.mxu1 %v1730_v40  ;;  %v674_v17 = vld [vmem:[#allocation4 + $0x40] sm:$0xff] }
  0xcb   : > { %985 = vmatpush1.bf16.msra.mxu0 %v1706_v19 }
  0xcc   : > { %986 = vmatprep.subr.bf16.mxu0 %v1711_v20 }
  0xce   : > { %594 = vmatmul.mubr.bf16.gmra.mrb[16].mxu0 %v1681_v28 }
  0xcf   : > { %603 = vmatprep.mubr.bf16.mxu0 %v1915_v50  ;;  %987 = vmatpush1.bf16.msra.mxu0 %v1709_v21  ;;  %v676_v21 = vld [vmem:[#allocation4 + $0x50] sm:$0xff] }
  0xd0   : > { %988 = vmatprep.subr.bf16.mxu0 %v1714_v22 }
  0xd3   : > { %989 = vmatpush1.bf16.msra.mxu0 %v1712_v24 }
  0xd4   : > { %990 = vmatprep.subr.bf16.mxu0 %v1717_v25  ;;  %v706_v25 = vmul.f32 0.1, %v674_v17 }
  0xd6   : > { %604 = vmatmul.mubr.bf16.gmra.mrb[20].mxu0 %v1682_v33  ;;  %v709_v33 = vmul.f32 0.1, %v677_v23 }
  0xd7   : > { %613 = vmatprep.mubr.bf16.mxu0 %v1915_v50  ;;  %991 = vmatpush1.bf16.msra.mxu0 %v1715_v26 }
  0xd8   : > { %992 = vmatprep.subr.bf16.mxu0 %v1720_v27  ;;  %v707_v27 = vmul.f32 0.1, %v675_v18 }
  0xdb   : > { %993 = vmatpush1.bf16.msra.mxu0 %v1718_v29 }
  0xdc   : > { %994 = vmatprep.subr.bf16.mxu0 %v1723_v30  ;;  %v708_v30 = vmul.f32 0.1, %v676_v21 }
  0xde   : > { %614 = vmatmul.mubr.bf16.gmra.mrb[24].mxu0 %v1683_v35 }
  0xdf   : > { %623 = vmatprep.mubr.bf16.mxu0 %v1915_v50  ;;  %995 = vmatpush1.bf16.msra.mxu0 %v1721_v31  ;;  %v700_v50 = vmul.f32 0.1, %v668_v43 }
  0xe0   : > { %996 = vmatprep.subr.bf16.mxu0 %v1726_v32 }
  0xe3   : > { %997 = vmatpush1.bf16.msra.mxu0 %v1724_v34 }
  0xe4   : > { %998 = vmatprep.subr.bf16.mxu0 %v1729_v37 }
  0xe6   : > { %624 = vmatmul.mubr.bf16.gmra.mrb[28].mxu0 %v1684_v36 }
  0xe7   : > { %999 = vmatpush1.bf16.msra.mxu0 %v1727_v38 }
  0xe8   : > { %1000 = vmatprep.subr.bf16.mxu0 %v1732_v39  ;;  %v678_v39 = vld [vmem:[#allocation4 + $0x60] sm:$0xff] }
  0xeb   : > { %1001 = vmatpush1.bf16.msra.mxu0 %v1730_v40  ;;  %v679_v40 = vld [vmem:[#allocation4 + $0x68] sm:$0xff] }
 0x181   : > { %v555_v45 = vpop.f32.mrb[0].mxu0 }
 0x182   : > { %v634_v48 = vmul.f32 0.9, %v555_v45  ;;  %v557_v49 = vpop.f32.mrb[1].mxu0 }
 0x183   : > { %v635_v51 = vmul.f32 0.9, %v557_v49  ;;  %v559_v52 = vpop.f32.mrb[2].mxu0 }
 0x184   : > { %v636_v54 = vmul.f32 0.9, %v559_v52  ;;  %v561_v55 = vpop.f32.mrb[3].mxu0  ;;  %v2163_v57 = vadd.f32 %v698_v46, %v634_v48  ;;  %v711_v48 = vmul.f32 0.1, %v679_v40 }
 0x185   : > { %v637_v56 = vmul.f32 0.9, %v561_v55  ;;  %v2167_v61 = vadd.f32 %v699_v47, %v635_v51  ;;  %v710_v47 = vmul.f32 0.1, %v678_v39  ;;  %v712_v52 = vmul.f32 0.1, %v680_v41 }
 0x186   : > { %v2165_v58 = vadd.f32 %v700_v50, %v636_v54  ;;  %v713_v55 = vmul.f32 0.1, %v681_v44 }
 0x187   : > { %v2169_v62 = vadd.f32 %v701_v53, %v637_v56 }
 0x188   : > { %v762_v0 = vpack.c.bf16 %v2165_v58, %v2163_v57 }
 0x189   : > { %v565_v2 = vpop.f32.mrb[4].mxu0  ;;  %v763_v5 = vpack.c.bf16 %v2169_v62, %v2167_v61 }
 0x18a   : > { %v638_v6 = vmul.f32 0.9, %v565_v2  ;;  %v567_v7 = vpop.f32.mrb[5].mxu0  ;;  %v683_v2 = vld [vmem:[#allocation4 + $0x88] sm:$0xff] }
 0x18b   : > { %v639_v9 = vmul.f32 0.9, %v567_v7  ;;  %v569_v10 = vpop.f32.mrb[6].mxu0  ;;  %1002 = vmatprep.mubr.bf16.mxu0 %v763_v5  ;;  %v684_v5 = vld [vmem:[#allocation4 + $0x90] sm:$0xff] }
 0x18c   : > { %v640_v12 = vmul.f32 0.9, %v569_v10  ;;  %v571_v13 = vpop.f32.mrb[7].mxu0  ;;  %1003 = vmatmul.mubr.bf16.vlgmr.msra.gmra.mrb[32].mxu0 %v762_v0  ;;  %v2175_v15 = vadd.f32 %v702_v3, %v638_v6  ;;  %v685_v6 = vld [vmem:[#allocation4 + $0x98] sm:$0xff]  ;;  %v715_v10 = vmul.f32 0.1, %v683_v2 }
 0x18d   : > { %v641_v14 = vmul.f32 0.9, %v571_v13  ;;  %v2179_v19 = vadd.f32 %v703_v4, %v639_v9  ;;  %v714_v9 = vmul.f32 0.1, %v682_v1  ;;  %v717_v21 = vmul.f32 0.1, %v685_v6 }
 0x18e   : > { %v2177_v16 = vadd.f32 %v704_v8, %v640_v12 }
 0x18f   : > { %v2181_v20 = vadd.f32 %v705_v11, %v641_v14  ;;  %v716_v14 = vmul.f32 0.1, %v684_v5 }
 0x190   : > { %v764_v22 = vpack.c.bf16 %v2177_v16, %v2175_v15 }
 0x191   : > { %v575_v24 = vpop.f32.mrb[8].mxu0  ;;  %v765_v26 = vpack.c.bf16 %v2181_v20, %v2179_v19 }
 0x192   : > { %v642_v28 = vmul.f32 0.9, %v575_v24  ;;  %v577_v29 = vpop.f32.mrb[9].mxu0 }
 0x193   : > { %v643_v31 = vmul.f32 0.9, %v577_v29  ;;  %v579_v32 = vpop.f32.mrb[10].mxu0  ;;  %1012 = vmatprep.mubr.bf16.mxu0 %v765_v26 }
 0x194   : > { %v644_v34 = vmul.f32 0.9, %v579_v32  ;;  %v581_v35 = vpop.f32.mrb[11].mxu0  ;;  %1013 = vmatmul.mubr.bf16.gmra.mrb[36].mxu0 %v764_v22  ;;  %v2187_v37 = vadd.f32 %v706_v25, %v642_v28  ;;  %v687_v28 = vld [vmem:[#allocation4 + $0xa8] sm:$0xff]  ;;  %v689_v32 = vld [vmem:[#allocation4 + $0xb8] sm:$0xff] }
 0x195   : > { %v645_v36 = vmul.f32 0.9, %v581_v35  ;;  %v2191_v42 = vadd.f32 %v707_v27, %v643_v31  ;;  %v686_v27 = vld [vmem:[#allocation4 + $0xa0] sm:$0xff]  ;;  %v688_v31 = vld [vmem:[#allocation4 + $0xb0] sm:$0xff] }
 0x196   : > { %v2189_v38 = vadd.f32 %v708_v30, %v644_v34  ;;  %v718_v35 = vmul.f32 0.1, %v686_v27  ;;  %v720_v44 = vmul.f32 0.1, %v688_v31  ;;  %v696_v31 = vld [vmem:[#allocation4 + $0xf0] sm:$0xff] }
 0x197   : > { %v2193_v43 = vadd.f32 %v709_v33, %v645_v36  ;;  %v719_v36 = vmul.f32 0.1, %v687_v28 }
 0x198   : > { %v766_v45 = vpack.c.bf16 %v2189_v38, %v2187_v37 }
 0x199   : > { %v585_v46 = vpop.f32.mrb[12].mxu0  ;;  %v767_v49 = vpack.c.bf16 %v2193_v43, %v2191_v42 }
 0x19a   : > { %v646_v50 = vmul.f32 0.9, %v585_v46  ;;  %v587_v51 = vpop.f32.mrb[13].mxu0 }
 0x19b   : > { %v647_v53 = vmul.f32 0.9, %v587_v51  ;;  %v589_v54 = vpop.f32.mrb[14].mxu0  ;;  %1022 = vmatprep.mubr.bf16.mxu1 %v767_v49 }
 0x19c   : > { %v648_v56 = vmul.f32 0.9, %v589_v54  ;;  %v591_v59 = vpop.f32.mrb[15].mxu0  ;;  %1023 = vmatmul.mubr.bf16.vlgmr.msra.gmra.mrb[0].mxu1 %v766_v45  ;;  %v2199_v63 = vadd.f32 %v710_v47, %v646_v50  ;;  %v721_v47 = vmul.f32 0.1, %v689_v32  ;;  %v691_v54 = vld [vmem:[#allocation4 + $0xc8] sm:$0xff] }
 0x19d   : > { %v649_v60 = vmul.f32 0.9, %v591_v59  ;;  %v2203_v3 = vadd.f32 %v711_v48, %v647_v53  ;;  %v690_v53 = vld [vmem:[#allocation4 + $0xc0] sm:$0xff]  ;;  %v692_v59 = vld [vmem:[#allocation4 + $0xd0] sm:$0xff]  ;;  %v723_v6 = vmul.f32 0.1, %v691_v54 }
 0x19e   : > { %v2201_v0 = vadd.f32 %v712_v52, %v648_v56  ;;  %v722_v5 = vmul.f32 0.1, %v690_v53  ;;  %v697_v32 = vld [vmem:[#allocation4 + $0xf8] sm:$0xff] }
 0x19f   : > { %v2205_v4 = vadd.f32 %v713_v55, %v649_v60  ;;  %v693_v60 = vld [vmem:[#allocation4 + $0xd8] sm:$0xff] }
 0x1a0   : > { %v768_v7 = vpack.c.bf16 %v2201_v0, %v2199_v63 }
 0x1a1   : > { %v595_v8 = vpop.f32.mrb[16].mxu0  ;;  %v769_v11 = vpack.c.bf16 %v2205_v4, %v2203_v3 }
 0x1a2   : > { %v650_v12 = vmul.f32 0.9, %v595_v8  ;;  %v597_v13 = vpop.f32.mrb[17].mxu0 }
 0x1a3   : > { %v651_v17 = vmul.f32 0.9, %v597_v13  ;;  %v599_v18 = vpop.f32.mrb[18].mxu0  ;;  %1032 = vmatprep.mubr.bf16.mxu1 %v769_v11  ;;  %v725_v13 = vmul.f32 0.1, %v693_v60 }
 0x1a4   : > { %v652_v22 = vmul.f32 0.9, %v599_v18  ;;  %v601_v23 = vpop.f32.mrb[19].mxu0  ;;  %1033 = vmatmul.mubr.bf16.gmra.mrb[4].mxu1 %v768_v7  ;;  %v2211_v25 = vadd.f32 %v714_v9, %v650_v12 }
 0x1a5   : > { %v653_v24 = vmul.f32 0.9, %v601_v23  ;;  %v2215_v29 = vadd.f32 %v715_v10, %v651_v17  ;;  %v724_v10 = vmul.f32 0.1, %v692_v59  ;;  %v694_v23 = vld [vmem:[#allocation4 + $0xe0] sm:$0xff] }
 0x1a6   : > { %v2213_v26 = vadd.f32 %v716_v14, %v652_v22 }
 0x1a7   : > { %v2217_v30 = vadd.f32 %v717_v21, %v653_v24  ;;  %v695_v24 = vld [vmem:[#allocation4 + $0xe8] sm:$0xff] }
 0x1a8   : > { %v770_v33 = vpack.c.bf16 %v2213_v26, %v2211_v25 }
 0x1a9   : > { %v605_v34 = vpop.f32.mrb[20].mxu0  ;;  %v771_v39 = vpack.c.bf16 %v2217_v30, %v2215_v29 }
 0x1aa   : > { %v654_v40 = vmul.f32 0.9, %v605_v34  ;;  %v607_v41 = vpop.f32.mrb[21].mxu0 }
 0x1ab   : > { %v655_v45 = vmul.f32 0.9, %v607_v41  ;;  %v609_v46 = vpop.f32.mrb[22].mxu0  ;;  %1042 = vmatprep.mubr.bf16.mxu1 %v771_v39 }
 0x1ac   : > { %v656_v48 = vmul.f32 0.9, %v609_v46  ;;  %v611_v49 = vpop.f32.mrb[23].mxu0  ;;  %1043 = vmatmul.mubr.bf16.gmra.mrb[8].mxu1 %v770_v33  ;;  %v2223_v51 = vadd.f32 %v718_v35, %v654_v40  ;;  %v726_v35 = vmul.f32 0.1, %v694_v23 }
 0x1ad   : > { %v657_v50 = vmul.f32 0.9, %v611_v49  ;;  %v2227_v55 = vadd.f32 %v719_v36, %v655_v45  ;;  %v727_v36 = vmul.f32 0.1, %v695_v24 }
 0x1ae   : > { %v2225_v52 = vadd.f32 %v720_v44, %v656_v48  ;;  %v728_v44 = vmul.f32 0.1, %v696_v31 }
 0x1af   : > { %v2229_v56 = vadd.f32 %v721_v47, %v657_v50  ;;  %v729_v47 = vmul.f32 0.1, %v697_v32 }
 0x1b0   : > { %v772_v1 = vpack.c.bf16 %v2225_v52, %v2223_v51 }
 0x1b1   : > { %v615_v2 = vpop.f32.mrb[24].mxu0  ;;  %v773_v7 = vpack.c.bf16 %v2229_v56, %v2227_v55 }
 0x1b2   : > { %v658_v8 = vmul.f32 0.9, %v615_v2  ;;  %v617_v9 = vpop.f32.mrb[25].mxu0 }
 0x1b3   : > { %v659_v11 = vmul.f32 0.9, %v617_v9  ;;  %v619_v12 = vpop.f32.mrb[26].mxu0  ;;  %1052 = vmatprep.mubr.bf16.mxu1 %v773_v7 }
 0x1b4   : > { %v660_v14 = vmul.f32 0.9, %v619_v12  ;;  %v621_v17 = vpop.f32.mrb[27].mxu0  ;;  %1053 = vmatmul.mubr.bf16.gmra.mrb[12].mxu1 %v772_v1  ;;  %v2235_v21 = vadd.f32 %v722_v5, %v658_v8  ;;  %v2260_v5 = vstv %s1083_s14 }
 0x1b5   : > { %v661_v18 = vmul.f32 0.9, %v621_v17  ;;  %v2239_v27 = vadd.f32 %v723_v6, %v659_v11  ;;  %v2262_v6 = vstv %s360_s8  ;;  %v1085_v8 = vmul.f32 %v2260_v5, %v2163_v57 }
 0x1b6   : > { %v2237_v22 = vadd.f32 %v724_v10, %v660_v14  ;;  %v1086_v11 = vmul.f32 %v2260_v5, %v2167_v61  ;;  %v1087_v17 = vmul.f32 %v2260_v5, %v2165_v58  ;;  %v1088_v57 = vmul.f32 %v2260_v5, %v2169_v62 }
 0x1b7   : > { %v2241_v28 = vadd.f32 %v725_v13, %v661_v18  ;;  %v1089_v58 = vmul.f32 %v2260_v5, %v2175_v15  ;;  %v1090_v62 = vmul.f32 %v2260_v5, %v2179_v19 }
 0x1b8   : > { %v774_v33 = vpack.c.bf16 %v2237_v22, %v2235_v21 }
 0x1b9   : > { %v625_v34 = vpop.f32.mrb[28].mxu0  ;;  %v775_v39 = vpack.c.bf16 %v2241_v28, %v2239_v27 }
 0x1ba   : > { %v662_v40 = vmul.f32 0.9, %v625_v34  ;;  %v627_v41 = vpop.f32.mrb[29].mxu0 }
 0x1bb   : > { %v663_v45 = vmul.f32 0.9, %v627_v41  ;;  %v629_v46 = vpop.f32.mrb[30].mxu0  ;;  %1062 = vmatprep.mubr.bf16.mxu1 %v775_v39 }
 0x1bc   : > { %v664_v48 = vmul.f32 0.9, %v629_v46  ;;  %v631_v49 = vpop.f32.mrb[31].mxu0  ;;  %1063 = vmatmul.mubr.bf16.gmra.mrb[16].mxu1 %v774_v33  ;;  %v2247_v53 = vadd.f32 %v726_v35, %v662_v40 }
 0x1bd   : > { %v665_v50 = vmul.f32 0.9, %v631_v49  ;;  %v2251_v59 = vadd.f32 %v727_v36, %v663_v45  ;;  %v1091_v49 = vmul.f32 %v2260_v5, %v2177_v16  ;;  %v1093_v16 = vmul.f32 %v2260_v5, %v2187_v37 }
 0x1be   : > { %v2249_v54 = vadd.f32 %v728_v44, %v664_v48  ;;  %v1096_v37 = vmul.f32 %v2260_v5, %v2193_v43 }
 0x1bf   : > { %v2253_v60 = vadd.f32 %v729_v47, %v665_v50 }
 0x1c0   : > { %v776_v1 = vpack.c.bf16 %v2249_v54, %v2247_v53 }
 0x1c1   : > { %v777_v2 = vpack.c.bf16 %v2253_v60, %v2251_v59 }
 0x1c3   : > { %1072 = vmatprep.mubr.bf16.mxu1 %v777_v2  ;;  %v1092_v2 = vmul.f32 %v2260_v5, %v2181_v20 }
 0x1c4   : > { %1073 = vmatmul.mubr.bf16.gmra.mrb[20].mxu1 %v776_v1 }
 0x25f   : > { %v1004_v7 = vpop.f32.mrb[32].mxu0 }
 0x260   : > { %v1118_v9 = vmul.f32 %v2262_v6, %v1004_v7  ;;  %v1006_v10 = vpop.f32.mrb[33].mxu0 }
 0x261   : > { %v1119_v12 = vmul.f32 %v2262_v6, %v1006_v10  ;;  %v1008_v13 = vpop.f32.mrb[34].mxu0 }
 0x262   : > { %v1150_v14 = vadd.f32 %v1118_v9, %v1085_v8  ;;  %v1120_v18 = vmul.f32 %v2262_v6, %v1008_v13  ;;  %v1010_v23 = vpop.f32.mrb[35].mxu0 }
 0x263   : > { %v1151_v24 = vadd.f32 %v1119_v12, %v1086_v11  ;;  %v1121_v31 = vmul.f32 %v2262_v6, %v1010_v23  ;;  %v1094_v23 = vmul.f32 %v2260_v5, %v2191_v42 }
 0x264   : > { %v1182_v32 = vmax.f32 %v1150_v14, 0.0  ;;  %v1152_v33 = vadd.f32 %v1120_v18, %v1087_v17 }
 0x265   : > { %v1183_v34 = vmax.f32 %v1151_v24, 0.0  ;;  %v1153_v61 = vadd.f32 %v1121_v31, %v1088_v57 }
 0x266   : > { %v1184_v35 = vmax.f32 %v1152_v33, 0.0 }
 0x267   : > { %v1528_v36 = vpack.c.bf16 %v1183_v34, %v1182_v32  ;;  %v1185_v39 = vmax.f32 %v1153_v61, 0.0  ;;  %v1014_v40 = vpop.f32.mrb[36].mxu0  ;;  %v1095_v32 = vmul.f32 %v2260_v5, %v2189_v38  ;;  %v1097_v38 = vmul.f32 %v2260_v5, %v2199_v63 }
 0x268   : > { %v1122_v41 = vmul.f32 %v2262_v6, %v1014_v40  ;;  %v1016_v44 = vpop.f32.mrb[37].mxu0 }
 0x269   : > { %1310 = vst [vmem:[#allocation10] sm:$0xff] %v1528_v36  ;;  %v1529_v45 = vpack.c.bf16 %v1185_v39, %v1184_v35  ;;  %v1123_v46 = vmul.f32 %v2262_v6, %v1016_v44  ;;  %v1018_v47 = vpop.f32.mrb[38].mxu0 }
 0x26a   : > { %v1154_v48 = vadd.f32 %v1122_v41, %v1089_v58  ;;  %v1124_v50 = vmul.f32 %v2262_v6, %v1018_v47  ;;  %v1020_v1 = vpop.f32.mrb[39].mxu0  ;;  %v1098_v47 = vmul.f32 %v2260_v5, %v2203_v3 }
 0x26b   : > { %1311 = vst [vmem:[#allocation10 + $0x8] sm:$0xff] %v1529_v45  ;;  %v1155_v15 = vadd.f32 %v1123_v46, %v1090_v62  ;;  %v1125_v7 = vmul.f32 %v2262_v6, %v1020_v1  ;;  %v1099_v1 = vmul.f32 %v2260_v5, %v2201_v0  ;;  %v1101_v0 = vmul.f32 %v2260_v5, %v2211_v25 }
 0x26c   : > { %v1186_v8 = vmax.f32 %v1154_v48, 0.0  ;;  %v1156_v9 = vadd.f32 %v1124_v50, %v1091_v49 }
 0x26d   : > { %v1187_v19 = vmax.f32 %v1155_v15, 0.0  ;;  %v1157_v10 = vadd.f32 %v1125_v7, %v1092_v2  ;;  %v1100_v7 = vmul.f32 %v2260_v5, %v2205_v4  ;;  %v1102_v4 = vmul.f32 %v2260_v5, %v2215_v29 }
 0x26e   : > { %v1188_v11 = vmax.f32 %v1156_v9, 0.0 }
 0x26f   : > { %v1530_v12 = vpack.c.bf16 %v1187_v19, %v1186_v8  ;;  %v1189_v13 = vmax.f32 %v1157_v10, 0.0  ;;  %v1024_v14 = vpop.f32.mrb[0].mxu1 }
 0x270   : > { %v1126_v17 = vmul.f32 %v2262_v6, %v1024_v14  ;;  %v1026_v18 = vpop.f32.mrb[1].mxu1 }
 0x271   : > { %1312 = vst [vmem:[#allocation10 + $0x10] sm:$0xff] %v1530_v12  ;;  %v1531_v20 = vpack.c.bf16 %v1189_v13, %v1188_v11  ;;  %v1127_v24 = vmul.f32 %v2262_v6, %v1026_v18  ;;  %v1028_v57 = vpop.f32.mrb[2].mxu1 }
 0x272   : > { %v1158_v31 = vadd.f32 %v1126_v17, %v1093_v16  ;;  %v1128_v33 = vmul.f32 %v2262_v6, %v1028_v57  ;;  %v1030_v34 = vpop.f32.mrb[3].mxu1  ;;  %v1103_v57 = vmul.f32 %v2260_v5, %v2213_v26  ;;  %v1105_v26 = vmul.f32 %v2260_v5, %v2223_v51 }
 0x273   : > { %1313 = vst [vmem:[#allocation10 + $0x18] sm:$0xff] %v1531_v20  ;;  %v1159_v61 = vadd.f32 %v1127_v24, %v1094_v23  ;;  %v1129_v35 = vmul.f32 %v2262_v6, %v1030_v34 }
 0x274   : > { %v1190_v42 = vmax.f32 %v1158_v31, 0.0  ;;  %v1160_v36 = vadd.f32 %v1128_v33, %v1095_v32  ;;  %v1104_v33 = vmul.f32 %v2260_v5, %v2217_v30  ;;  %v1106_v30 = vmul.f32 %v2260_v5, %v2227_v55 }
 0x275   : > { %v1191_v39 = vmax.f32 %v1159_v61, 0.0  ;;  %v1161_v40 = vadd.f32 %v1129_v35, %v1096_v37 }
 0x276   : > { %v1192_v58 = vmax.f32 %v1160_v36, 0.0 }
 0x277   : > { %v1532_v41 = vpack.c.bf16 %v1191_v39, %v1190_v42  ;;  %v1193_v44 = vmax.f32 %v1161_v40, 0.0  ;;  %v1034_v45 = vpop.f32.mrb[4].mxu1 }
 0x278   : > { %v1130_v62 = vmul.f32 %v2262_v6, %v1034_v45  ;;  %v1036_v46 = vpop.f32.mrb[5].mxu1 }
 0x279   : > { %1314 = vst [vmem:[#allocation10 + $0x20] sm:$0xff] %v1532_v41  ;;  %v1533_v43 = vpack.c.bf16 %v1193_v44, %v1192_v58  ;;  %v1131_v48 = vmul.f32 %v2262_v6, %v1036_v46  ;;  %v1038_v49 = vpop.f32.mrb[6].mxu1  ;;  %v1107_v46 = vmul.f32 %v2260_v5, %v2225_v52  ;;  %v1109_v52 = vmul.f32 %v2260_v5, %v2235_v21 }
 0x27a   : > { %v1162_v50 = vadd.f32 %v1130_v62, %v1097_v38  ;;  %v1132_v15 = vmul.f32 %v2262_v6, %v1038_v49  ;;  %v1040_v2 = vpop.f32.mrb[7].mxu1 }
 0x27b   : > { %1315 = vst [vmem:[#allocation10 + $0x28] sm:$0xff] %v1533_v43  ;;  %v1163_v63 = vadd.f32 %v1131_v48, %v1098_v47  ;;  %v1133_v8 = vmul.f32 %v2262_v6, %v1040_v2  ;;  %v1108_v48 = vmul.f32 %v2260_v5, %v2229_v56  ;;  %v1110_v56 = vmul.f32 %v2260_v5, %v2239_v27 }
 0x27c   : > { %v1194_v9 = vmax.f32 %v1162_v50, 0.0  ;;  %v1164_v19 = vadd.f32 %v1132_v15, %v1099_v1 }
 0x27d   : > { %v1195_v3 = vmax.f32 %v1163_v63, 0.0  ;;  %v1165_v10 = vadd.f32 %v1133_v8, %v1100_v7 }
 0x27e   : > { %v1196_v11 = vmax.f32 %v1164_v19, 0.0 }
 0x27f   : > { %v1534_v12 = vpack.c.bf16 %v1195_v3, %v1194_v9  ;;  %v1197_v13 = vmax.f32 %v1165_v10, 0.0  ;;  %v1044_v14 = vpop.f32.mrb[8].mxu1 }
 0x280   : > { %v1134_v16 = vmul.f32 %v2262_v6, %v1044_v14  ;;  %v1046_v17 = vpop.f32.mrb[9].mxu1 }
 0x281   : > { %1316 = vst [vmem:[#allocation10 + $0x30] sm:$0xff] %v1534_v12  ;;  %v1535_v18 = vpack.c.bf16 %v1197_v13, %v1196_v11  ;;  %v1135_v23 = vmul.f32 %v2262_v6, %v1046_v17  ;;  %v1048_v20 = vpop.f32.mrb[10].mxu1  ;;  %v1111_v13 = vmul.f32 %v2260_v5, %v2237_v22  ;;  %v1113_v22 = vmul.f32 %v2260_v5, %v2247_v53 }
 0x282   : > { %v1166_v24 = vadd.f32 %v1134_v16, %v1101_v0  ;;  %v1136_v31 = vmul.f32 %v2262_v6, %v1048_v20  ;;  %v1050_v32 = vpop.f32.mrb[11].mxu1  ;;  %v1112_v16 = vmul.f32 %v2260_v5, %v2241_v28  ;;  %v1114_v28 = vmul.f32 %v2260_v5, %v2251_v59 }
 0x283   : > { %1317 = vst [vmem:[#allocation10 + $0x38] sm:$0xff] %v1535_v18  ;;  %v1167_v25 = vadd.f32 %v1135_v23, %v1102_v4  ;;  %v1137_v34 = vmul.f32 %v2262_v6, %v1050_v32 }
 0x284   : > { %v1198_v37 = vmax.f32 %v1166_v24, 0.0  ;;  %v1168_v61 = vadd.f32 %v1136_v31, %v1103_v57 }
 0x285   : > { %v1199_v29 = vmax.f32 %v1167_v25, 0.0  ;;  %v1169_v35 = vadd.f32 %v1137_v34, %v1104_v33 }
 0x286   : > { %v1200_v42 = vmax.f32 %v1168_v61, 0.0 }
 0x287   : > { %v1536_v36 = vpack.c.bf16 %v1199_v29, %v1198_v37  ;;  %v1201_v39 = vmax.f32 %v1169_v35, 0.0  ;;  %v1054_v40 = vpop.f32.mrb[12].mxu1  ;;  %v1115_v29 = vmul.f32 %v2260_v5, %v2249_v54 }
 0x288   : > { %v1138_v58 = vmul.f32 %v2262_v6, %v1054_v40  ;;  %v1056_v41 = vpop.f32.mrb[13].mxu1 }
 0x289   : > { %1318 = vst [vmem:[#allocation10 + $0x40] sm:$0xff] %v1536_v36  ;;  %v1537_v44 = vpack.c.bf16 %v1201_v39, %v1200_v42  ;;  %v1139_v45 = vmul.f32 %v2262_v6, %v1056_v41  ;;  %v1058_v38 = vpop.f32.mrb[14].mxu1  ;;  %v1116_v36 = vmul.f32 %v2260_v5, %v2253_v60 }
 0x28a   : > { %v1170_v62 = vadd.f32 %v1138_v58, %v1105_v26  ;;  %v1140_v43 = vmul.f32 %v2262_v6, %v1058_v38  ;;  %v1060_v47 = vpop.f32.mrb[15].mxu1 }
 0x28b   : > { %1319 = vst [vmem:[#allocation10 + $0x48] sm:$0xff] %v1537_v44  ;;  %v1171_v51 = vadd.f32 %v1139_v45, %v1106_v30  ;;  %v1141_v49 = vmul.f32 %v2262_v6, %v1060_v47 }
 0x28c   : > { %v1202_v50 = vmax.f32 %v1170_v62, 0.0  ;;  %v1172_v1 = vadd.f32 %v1140_v43, %v1107_v46 }
 0x28d   : > { %v1203_v55 = vmax.f32 %v1171_v51, 0.0  ;;  %v1173_v15 = vadd.f32 %v1141_v49, %v1108_v48 }
 0x28e   : > { %v1204_v2 = vmax.f32 %v1172_v1, 0.0 }
 0x28f   : > { %v1538_v63 = vpack.c.bf16 %v1203_v55, %v1202_v50  ;;  %v1205_v7 = vmax.f32 %v1173_v15, 0.0  ;;  %v1064_v8 = vpop.f32.mrb[16].mxu1 }
 0x290   : > { %v1142_v9 = vmul.f32 %v2262_v6, %v1064_v8  ;;  %v1066_v19 = vpop.f32.mrb[17].mxu1 }
 0x291   : > { %1320 = vst [vmem:[#allocation10 + $0x50] sm:$0xff] %v1538_v63  ;;  %v1539_v3 = vpack.c.bf16 %v1205_v7, %v1204_v2  ;;  %v1143_v10 = vmul.f32 %v2262_v6, %v1066_v19  ;;  %v1068_v11 = vpop.f32.mrb[18].mxu1 }
 0x292   : > { %v1174_v12 = vadd.f32 %v1142_v9, %v1109_v52  ;;  %v1144_v14 = vmul.f32 %v2262_v6, %v1068_v11  ;;  %v1070_v0 = vpop.f32.mrb[19].mxu1 }
 0x293   : > { %1321 = vst [vmem:[#allocation10 + $0x58] sm:$0xff] %v1539_v3  ;;  %v1175_v21 = vadd.f32 %v1143_v10, %v1110_v56  ;;  %v1145_v17 = vmul.f32 %v2262_v6, %v1070_v0 }
 0x294   : > { %v1206_v18 = vmax.f32 %v1174_v12, 0.0  ;;  %v1176_v4 = vadd.f32 %v1144_v14, %v1111_v13 }
 0x295   : > { %v1207_v27 = vmax.f32 %v1175_v21, 0.0  ;;  %v1177_v23 = vadd.f32 %v1145_v17, %v1112_v16 }
 0x296   : > { %v1208_v20 = vmax.f32 %v1176_v4, 0.0 }
 0x297   : > { %v1540_v24 = vpack.c.bf16 %v1207_v27, %v1206_v18  ;;  %v1209_v57 = vmax.f32 %v1177_v23, 0.0  ;;  %v1074_v31 = vpop.f32.mrb[20].mxu1 }
 0x298   : > { %v1146_v32 = vmul.f32 %v2262_v6, %v1074_v31  ;;  %v1076_v25 = vpop.f32.mrb[21].mxu1 }
 0x299   : > { %1322 = vst [vmem:[#allocation10 + $0x60] sm:$0xff] %v1540_v24  ;;  %v1541_v33 = vpack.c.bf16 %v1209_v57, %v1208_v20  ;;  %v1147_v34 = vmul.f32 %v2262_v6, %v1076_v25  ;;  %v1078_v37 = vpop.f32.mrb[22].mxu1 }
 0x29a   : > { %v1178_v61 = vadd.f32 %v1146_v32, %v1113_v22  ;;  %v1148_v35 = vmul.f32 %v2262_v6, %v1078_v37  ;;  %v1080_v42 = vpop.f32.mrb[23].mxu1 }
 0x29b   : > { %1323 = vst [vmem:[#allocation10 + $0x68] sm:$0xff] %v1541_v33  ;;  %v1179_v53 = vadd.f32 %v1147_v34, %v1114_v28  ;;  %v1149_v39 = vmul.f32 %v2262_v6, %v1080_v42 }
 0x29c   : > { %v1210_v40 = vmax.f32 %v1178_v61, 0.0  ;;  %v1180_v59 = vadd.f32 %v1148_v35, %v1115_v29 }
 0x29d   : > { %v1211_v26 = vmax.f32 %v1179_v53, 0.0  ;;  %v1181_v58 = vadd.f32 %v1149_v39, %v1116_v36 }
 0x29e   : > { %v1212_v41 = vmax.f32 %v1180_v59, 0.0 }
 0x29f   : > { %v1542_v54 = vpack.c.bf16 %v1211_v26, %v1210_v40  ;;  %v1213_v44 = vmax.f32 %v1181_v58, 0.0 }
 0x2a1   : > { %1324 = vst [vmem:[#allocation10 + $0x70] sm:$0xff] %v1542_v54  ;;  %v1543_v30 = vpack.c.bf16 %v1213_v44, %v1212_v41 }
 0x2a3   : > { %1325 = vst [vmem:[#allocation10 + $0x78] sm:$0xff] %v1543_v30 }
 0x2a4   : > { %1842 = shalt.err (!%p1839_p8)
}
 0x2a5   : > { %s1843_s17 = scalar_lea.hbm %s2400_s4, 2048 }
 0x2a6   : > { %p1844_p12 = scmp.ne.s32.totalorder %s2400_s4, %s1843_s17  ;;  %p1849_p9 = scmp.lt.u32.totalorder %s1843_s17, %s2400_s4 }
 0x2a8   : > { %p1845_p4 = pnand %p1844_p12, %p1606_p10 }
 0x2aa   : > { %p1846_p6 = pneg %p1845_p4 }
 0x2ac   : > { %p1851_p5 = pnand %p1849_p9, %p1846_p6 }
 0x2ae   : > { %1854 = shalt.err (!%p1851_p5)
}
 0x2af   : > { %s1917_s21 = smov 128   ;;  %s1918_s22 = smov 8  }
 0x2b0   : > { %1587 = dma.vmem_to_hbm [thread:$0]  (%p1606_p10), %s1333_s16, 2048, %s2400_s4, [#allocation6], %s1917_s21, %s1917_s21, %s1918_s22  }
 0x2b1   : > { %1886 = dma.done.wait (%p1606_p10), [#allocation6], 2048  }
 0x2b2   : > { %1888 = vsyncadd (%p1606_p10), [#allocation6], 4294965248 }
 0x2b3 PF: > { %p18_p7 = scmp.ge.s32.totalorder %s1978_s29, 4   ;;  %s2418_s25 = smov %s1895_s26 }
 0x2b4   : > { %s2419_s26 = smov %s1899_s27  ;;  %s2420_s27 = smov %s1988_s6 }
 0x2b5   : > { %s2421_s28 = smov %s1978_s29  ;;  %20 = sbr.rel (!%p18_p7) target bundleno = 16 (0x10), region = 80 }
 0x2bc   :  { %1348 = vsyncpa [#allocation5], 1 }
 0x2bd   :  { %1350 = vsyncpa [#allocation5 + $0x1], 1 }
 0x2be   :  { %1351 = vsyncpa [#allocation8], 1 }
 0x2bf   :  { %1352 = vsyncpa [#allocation6], 1 }
 0x2c0   :  { %1354 = vsyncpa [#allocation6 + $0x1], 1 }

</bundles_post_ra>
